<compile_context>
chip_gen: v6e
topology: v6e:2x2x1
jax: 0.10.0
libtpu: 0.0.40
codegen_flags: <defaults>
</compile_context>

<pallas_src>
import jax
import jax.numpy as jnp
import numpy as np
from jax.experimental import pallas as pl
from jax.experimental.pallas import tpu as pltpu

NHEROS = 113
TEAM_SIZE = 5


def _round_up(x, m):
    return ((x + m - 1) // m) * m


# ----------------------------------------------------------------------------------
# Pallas kernel
# ----------------------------------------------------------------------------------
def _eq1to2net_kernel(e_ref, wT_ref, beq_ref, wfc1_ref, wfc2_ref, bfc_ref, out_ref, y_ref):
    """One batch tile (TB samples), both teams.

    e_ref   : (D, 2*n*TB) bf16  relu'd embeddings, columns ordered (team, member, sample)
    wT_ref  : (5H, D)     bf16  basis coefficients, wT[k*H + h, d] = coefs[d, h, k]
    beq_ref : (H, 1) f32  Eq1to2 bias        wfc1/wfc2 : (C, H) f32 split head weight
    bfc_ref : (C, 1) f32  head bias          out_ref   : (C, TB) f32 logits (lane-dense)
    y_ref   : (5H, 2*n*TB) f32 VMEM scratch for the fused matmul result
    """
    H = beq_ref.shape[0]
    TB = out_ref.shape[1]
    n = e_ref.shape[1] // (2 * TB)
    inv_n = 1.0 / n

    # One fused MXU matmul: both teams x n members x 5 bases, f32 accumulation.
    # y[k*H + h, (s*n + i)*TB + t] = sum_d coefs[d, h, k] * relu(E_s[b, i, d])
    y_ref[...] = jnp.dot(wT_ref[...], e_ref[...], preferred_element_type=jnp.float32)

    def blk(s, i, k):                      # static slice -> lane-dense (H, TB) tile
        r = k * H
        c = (s * n + i) * TB
        return y_ref[r:r + H, c:c + TB]

    def pooled(s):
        # op2: diag(mean over members) ; op5: mean over members, everywhere (+ bias)
        diagsum = ((blk(s, 0, 1) + blk(s, 1, 1)) + (blk(s, 2, 1) + blk(s, 3, 1))
                   + blk(s, 4, 1)) * inv_n
        const = (((blk(s, 0, 4) + blk(s, 1, 4)) + (blk(s, 2, 4) + blk(s, 3, 4))
                  + blk(s, 4, 4)) * inv_n) + beq_ref[...]
        # out[h, i, j] = row_i + col_j + const + delta_ij * (diag_i + diagsum)
        # pool = sum_{i,j} relu(out); unrolled 5x5 with per-i partials + tree adds (ILP).
        partials = []
        for i in range(n):
            base_i = blk(s, i, 3) + const          # op4: x[i] broadcast over columns
            diag_i = blk(s, i, 0) + diagsum        # op1 + op2 (diagonal only)
            terms = []
            for j in range(n):
                t = base_i + blk(s, j, 2)          # op3: x[j] broadcast over rows
                if i == j:
                    t = t + diag_i
                terms.append(jnp.maximum(t, 0.0))
            partials.append((terms[0] + terms[1]) + (terms[2] + terms[3]) + terms[4])
        return (partials[0] + partials[1]) + (partials[2] + partials[3]) + partials[4]

    p1 = pooled(0)                                 # (H, TB)
    p2 = pooled(1)                                 # (H, TB)

    # Split head (no cross-lane concat):  logits^T = W1 @ p1 + W2 @ p2 + b
    out_ref[...] = (jnp.dot(wfc1_ref[...], p1, preferred_element_type=jnp.float32)
                    + jnp.dot(wfc2_ref[...], p2, preferred_element_type=jnp.float32)
                    + bfc_ref[...])


# ----------------------------------------------------------------------------------
# Wrapper (glue: embedding gather, layout transform, pallas_call)
# ----------------------------------------------------------------------------------
def eq1to2net_forward(x1, x2, params, *, tile_b=256):
    """x1, x2: (B, TEAM_SIZE) int hero ids.  Returns (B, num_classes) logits (f32)."""
    emb = params["embed"]                          # (NHEROS, D)
    coefs = params["coefs"]                        # (D, H, 5)
    beq = params["bias_eq"]                        # (H,)
    wfc = params["w_fc"]                           # (C, 2H)
    bfc = params["b_fc"]                           # (C,)

    D = emb.shape[1]
    H = coefs.shape[1]
    C = wfc.shape[0]
    n = TEAM_SIZE
    B = x1.shape[0]
    if D % 8 or H % 8:
        # Sublane slicing of the fused matmul result assumes 8-aligned D and H.
        raise NotImplementedError("eq1to2net_forward requires embed_dim % 8 == 0 and hid_dim % 8 == 0")

    # Batch tile: multiple of 128 so every in-kernel lane slice / output store is
    # lane-dense.  ~a few MiB of VMEM per step at TB=256; sweep up to 512-1024 if
    # desired (and prefer an even number of grid steps on v7x's two TensorCores).
    tile_b = _round_up(tile_b, 128)
    TB = min(tile_b, _round_up(B, 128))
    B_pad = _round_up(B, TB)
    G = B_pad // TB
    pad = B_pad - B
    if pad:
        zpad = jnp.zeros((pad, n), dtype=x1.dtype)
        x1 = jnp.concatenate([x1, zpad], axis=0)
        x2 = jnp.concatenate([x2, zpad], axis=0)

    # Gather + relu + batch-in-lanes layout (glue; fused by XLA).  Column order of the
    # kernel input is (grid step, team, member, sample-in-tile) so each grid block is a
    # contiguous (D, 2*n*TB) slab and all in-kernel slices land on 128-lane boundaries.
    E1 = jnp.maximum(emb[x1], 0.0)                 # (B_pad, n, D) f32
    E2 = jnp.maximum(emb[x2], 0.0)
    E = jnp.stack([E1, E2], axis=0)                # (2, B_pad, n, D)
    E = E.reshape(2, G, TB, n, D)
    E = jnp.transpose(E, (4, 1, 0, 3, 2))          # (D, G, 2, n, TB)
    e_all = E.reshape(D, G * 2 * n * TB).astype(jnp.bfloat16)   # bf16 matmul operand

    # Dense basis weight (no kron): wT[k*H + h, d] = coefs[d, h, k]  -> (5H, D)
    wT = jnp.transpose(coefs, (2, 1, 0)).reshape(5 * H, D).astype(jnp.bfloat16)

    args = (
        e_all,
        wT,
        beq.reshape(H, 1).astype(jnp.float32),
        wfc[:, :H].astype(jnp.float32),            # (C, H)  head weight, team-1 half
        wfc[:, H:].astype(jnp.float32),            # (C, H)  head weight, team-2 half
        bfc.reshape(C, 1).astype(jnp.float32),
    )

    in_specs = [
        pl.BlockSpec((D, 2 * n * TB), lambda g: (0, g)),
        pl.BlockSpec((5 * H, D), lambda g: (0, 0)),   # constant -> DMA'd once
        pl.BlockSpec((H, 1), lambda g: (0, 0)),
        pl.BlockSpec((C, H), lambda g: (0, 0)),
        pl.BlockSpec((C, H), lambda g: (0, 0)),
        pl.BlockSpec((C, 1), lambda g: (0, 0)),
    ]

    out = pl.pallas_call(
        _eq1to2net_kernel,
        grid=(G,),
        in_specs=in_specs,
        out_specs=pl.BlockSpec((C, TB), lambda g: (0, g)),       # lane-dense logits
        out_shape=jax.ShapeDtypeStruct((C, B_pad), jnp.float32),
        scratch_shapes=[pltpu.VMEM((5 * H, 2 * n * TB), jnp.float32)],
        compiler_params=pltpu.CompilerParams(dimension_semantics=("parallel",)),
    )(*args)
    return out[:, :B].T                             # (B, C)


# ----------------------------------------------------------------------------------
# Pure-JAX reference (mirrors the PyTorch forward) for correctness checking
# ----------------------------------------------------------------------------------
_HI = jax.lax.Precision.HIGHEST


def _ops_1_to_2(x, n):          # x: (B, D, m)
    eye = jnp.eye(n, dtype=x.dtype)
    s = jnp.sum(x, axis=2, keepdims=True)
    full = x.shape[:2] + (n, n)
    op1 = x[..., None] * eye
    op2 = (s[..., None] * eye) / n
    op3 = jnp.broadcast_to(x[:, :, None, :], full)
    op4 = jnp.broadcast_to(x[:, :, :, None], full)
    op5 = jnp.broadcast_to(s[:, :, :, None], full) / n
    return jnp.stack([op1, op2, op3, op4, op5], axis=2)


def _eq1to2_ref(x, coefs, bias):
    ops = _ops_1_to_2(x, x.shape[-1])
    out = jnp.einsum("dsk,bdkij->bsij", coefs, ops, precision=_HI)
    return out + bias[None, :, None, None]


def reference_forward(x1, x2, p):
    E1 = jax.nn.relu(p["embed"][x1])
    E2 = jax.nn.relu(p["embed"][x2])
    X1 = jnp.transpose(E1, (0, 2, 1))          # (B, D, n)
    X2 = jnp.transpose(E2, (0, 2, 1))
    eq1 = jax.nn.relu(_eq1to2_ref(X1, p["coefs"], p["bias_eq"])).sum(axis=(-1, -2))
    eq2 = jax.nn.relu(_eq1to2_ref(X2, p["coefs"], p["bias_eq"])).sum(axis=(-1, -2))
    pair = jnp.concatenate([eq1, eq2], axis=-1)
    return jnp.dot(pair, p["w_fc"].T, precision=_HI) + p["b_fc"]


# ----------------------------------------------------------------------------------
# Deterministic parameter init (shapes follow the module's __init__)
# ----------------------------------------------------------------------------------
def init_params(key, embed_dim, hid_dim, num_classes=2):
    D, H = embed_dim, hid_dim
    ks = jax.random.split(key, 6)
    sc = np.sqrt(2.0 / (D + H + 5)).astype(np.float32)
    scf = np.float32(1.0 / np.sqrt(2 * H))
    nrm = lambda k, s, scale: scale * jax.random.normal(k, s, dtype=jnp.float32)
    return {
        "embed": nrm(ks[0], (NHEROS, D), 1.0),
        "coefs": nrm(ks[1], (D, H, 5), sc),
        "bias_eq": nrm(ks[2], (H,), 0.1),
        "w_fc": nrm(ks[3], (num_classes, 2 * H), scf),
        "b_fc": nrm(ks[4], (num_classes,), 0.1),
    }


if __name__ == "__main__":
    B, D, H, C = 2, 32, 32, 2
    key = jax.random.PRNGKey(0)
    kp, kx1, kx2 = jax.random.split(key, 3)
    params = init_params(kp, D, H, C)
    x1 = jax.random.randint(kx1, (B, TEAM_SIZE), 0, NHEROS, dtype=jnp.int32)
    x2 = jax.random.randint(kx2, (B, TEAM_SIZE), 0, NHEROS, dtype=jnp.int32)

    # Tolerance slightly widened vs the pure-f32 version: the basis matmul now uses bf16
    # operands (f32 accumulation); logits are O(10), so rtol=2e-2 still dominates.
    out = jax.block_until_ready(eq1to2net_forward(x1, x2, params))
    ref = jax.block_until_ready(reference_forward(x1, x2, params))
    np.testing.assert_allclose(np.asarray(out), np.asarray(ref), rtol=2e-2, atol=2e-1)

    # Larger batch: exercises multiple grid steps + the padding path.
    B2 = 300
    kx3, kx4 = jax.random.split(jax.random.PRNGKey(1), 2)
    x1b = jax.random.randint(kx3, (B2, TEAM_SIZE), 0, NHEROS, dtype=jnp.int32)
    x2b = jax.random.randint(kx4, (B2, TEAM_SIZE), 0, NHEROS, dtype=jnp.int32)
    outb = jax.block_until_ready(eq1to2net_forward(x1b, x2b, params))
    refb = jax.block_until_ready(reference_forward(x1b, x2b, params))
    np.testing.assert_allclose(np.asarray(outb), np.asarray(refb), rtol=2e-2, atol=2e-1)

    print("KERNEL_OK")
</pallas_src>

<mosaic_0001>
module attributes {stable_mosaic.version = 11 : i64} {
  func.func @_eq1to2net_kernel(%arg0: i32, %arg1: memref<32x1280xbf16, #tpu.memory_space<vmem>>, %arg2: memref<160x32xbf16, #tpu.memory_space<vmem>>, %arg3: memref<32x1xf32, #tpu.memory_space<vmem>>, %arg4: memref<2x32xf32, #tpu.memory_space<vmem>>, %arg5: memref<2x32xf32, #tpu.memory_space<vmem>>, %arg6: memref<2x1xf32, #tpu.memory_space<vmem>>, %arg7: memref<2x128xf32, #tpu.memory_space<vmem>>, %arg8: memref<160x1280xf32, #tpu.memory_space<vmem>>) attributes {dimension_semantics = [#tpu.dimension_semantics<parallel>], iteration_bounds = array<i64: 1>, scalar_prefetch = 0 : i64, scratch_operands = 1 : i64, tpu.core_type = #tpu.core_type<tc>, window_params = [{transform_indices = @transform_0, window_bounds = array<i64: 32, 1280>}, {pipeline_mode = #tpu.pipeline_mode<synchronous>, transform_indices = @transform_1, window_bounds = array<i64: 160, 32>}, {pipeline_mode = #tpu.pipeline_mode<synchronous>, transform_indices = @transform_2, window_bounds = array<i64: 32, 1>}, {pipeline_mode = #tpu.pipeline_mode<synchronous>, transform_indices = @transform_3, window_bounds = array<i64: 2, 32>}, {pipeline_mode = #tpu.pipeline_mode<synchronous>, transform_indices = @transform_4, window_bounds = array<i64: 2, 32>}, {pipeline_mode = #tpu.pipeline_mode<synchronous>, transform_indices = @transform_5, window_bounds = array<i64: 2, 1>}, {transform_indices = @transform_6, window_bounds = array<i64: 2, 128>}]} {
    %c0 = arith.constant 0 : index
    %c0_0 = arith.constant 0 : index
    %0 = vector.load %arg2[%c0, %c0_0] : memref<160x32xbf16, #tpu.memory_space<vmem>>, vector<160x32xbf16>
    %c0_1 = arith.constant 0 : index
    %c0_2 = arith.constant 0 : index
    %1 = vector.load %arg1[%c0_1, %c0_2] : memref<32x1280xbf16, #tpu.memory_space<vmem>>, vector<32x1280xbf16>
    %cst = arith.constant dense<0.000000e+00> : vector<160x1280xf32>
    %2 = tpu.matmul %0, %1, %cst {dimension_numbers = #tpu.dot_dimension_numbers<[1], [0], [0], [1], [0, 0, 1, 1], [], []>} : vector<160x32xbf16>, vector<32x1280xbf16>, vector<160x1280xf32> -> vector<160x1280xf32>
    %c0_3 = arith.constant 0 : index
    %c0_4 = arith.constant 0 : index
    %3 = vector.load %arg8[%c0_3, %c0_4] : memref<160x1280xf32, #tpu.memory_space<vmem>>, vector<160x1280xf32>
    tpu.vector_store %arg8[%c0_3, %c0_4], %2 {strides = array<i32>} : memref<160x1280xf32, #tpu.memory_space<vmem>>, vector<160x1280xf32>,
    %c32 = arith.constant 32 : index
    %c0_5 = arith.constant 0 : index
    %4 = vector.load %arg8[%c32, %c0_5] : memref<160x1280xf32, #tpu.memory_space<vmem>>, vector<32x128xf32>
    %c32_6 = arith.constant 32 : index
    %c128 = arith.constant 128 : index
    %5 = vector.load %arg8[%c32_6, %c128] : memref<160x1280xf32, #tpu.memory_space<vmem>>, vector<32x128xf32>
    %6 = arith.addf %4, %5 : vector<32x128xf32>
    %c32_7 = arith.constant 32 : index
    %c256 = arith.constant 256 : index
    %7 = vector.load %arg8[%c32_7, %c256] : memref<160x1280xf32, #tpu.memory_space<vmem>>, vector<32x128xf32>
    %c32_8 = arith.constant 32 : index
    %c384 = arith.constant 384 : index
    %8 = vector.load %arg8[%c32_8, %c384] : memref<160x1280xf32, #tpu.memory_space<vmem>>, vector<32x128xf32>
    %9 = arith.addf %7, %8 : vector<32x128xf32>
    %10 = arith.addf %6, %9 : vector<32x128xf32>
    %c32_9 = arith.constant 32 : index
    %c512 = arith.constant 512 : index
    %11 = vector.load %arg8[%c32_9, %c512] : memref<160x1280xf32, #tpu.memory_space<vmem>>, vector<32x128xf32>
    %12 = arith.addf %10, %11 : vector<32x128xf32>
    %cst_10 = arith.constant 2.000000e-01 : f32
    %13 = vector.broadcast %cst_10 : f32 to vector<32x128xf32>
    %14 = arith.mulf %12, %13 : vector<32x128xf32>
    %c128_11 = arith.constant 128 : index
    %c0_12 = arith.constant 0 : index
    %15 = vector.load %arg8[%c128_11, %c0_12] : memref<160x1280xf32, #tpu.memory_space<vmem>>, vector<32x128xf32>
    %c128_13 = arith.constant 128 : index
    %c128_14 = arith.constant 128 : index
    %16 = vector.load %arg8[%c128_13, %c128_14] : memref<160x1280xf32, #tpu.memory_space<vmem>>, vector<32x128xf32>
    %17 = arith.addf %15, %16 : vector<32x128xf32>
    %c128_15 = arith.constant 128 : index
    %c256_16 = arith.constant 256 : index
    %18 = vector.load %arg8[%c128_15, %c256_16] : memref<160x1280xf32, #tpu.memory_space<vmem>>, vector<32x128xf32>
    %c128_17 = arith.constant 128 : index
    %c384_18 = arith.constant 384 : index
    %19 = vector.load %arg8[%c128_17, %c384_18] : memref<160x1280xf32, #tpu.memory_space<vmem>>, vector<32x128xf32>
    %20 = arith.addf %18, %19 : vector<32x128xf32>
    %21 = arith.addf %17, %20 : vector<32x128xf32>
    %c128_19 = arith.constant 128 : index
    %c512_20 = arith.constant 512 : index
    %22 = vector.load %arg8[%c128_19, %c512_20] : memref<160x1280xf32, #tpu.memory_space<vmem>>, vector<32x128xf32>
    %23 = arith.addf %21, %22 : vector<32x128xf32>
    %cst_21 = arith.constant 2.000000e-01 : f32
    %24 = vector.broadcast %cst_21 : f32 to vector<32x128xf32>
    %25 = arith.mulf %23, %24 : vector<32x128xf32>
    %c0_22 = arith.constant 0 : index
    %c0_23 = arith.constant 0 : index
    %26 = vector.load %arg3[%c0_22, %c0_23] : memref<32x1xf32, #tpu.memory_space<vmem>>, vector<32x1xf32>
    %27 = vector.broadcast %26 : vector<32x1xf32> to vector<32x128xf32>
    %28 = arith.addf %25, %27 : vector<32x128xf32>
    %c96 = arith.constant 96 : index
    %c0_24 = arith.constant 0 : index
    %29 = vector.load %arg8[%c96, %c0_24] : memref<160x1280xf32, #tpu.memory_space<vmem>>, vector<32x128xf32>
    %30 = arith.addf %29, %28 : vector<32x128xf32>
    %c0_25 = arith.constant 0 : index
    %c0_26 = arith.constant 0 : index
    %31 = vector.load %arg8[%c0_25, %c0_26] : memref<160x1280xf32, #tpu.memory_space<vmem>>, vector<32x128xf32>
    %32 = arith.addf %31, %14 : vector<32x128xf32>
    %c64 = arith.constant 64 : index
    %c0_27 = arith.constant 0 : index
    %33 = vector.load %arg8[%c64, %c0_27] : memref<160x1280xf32, #tpu.memory_space<vmem>>, vector<32x128xf32>
    %34 = arith.addf %30, %33 : vector<32x128xf32>
    %35 = arith.addf %34, %32 : vector<32x128xf32>
    %cst_28 = arith.constant 0.000000e+00 : f32
    %36 = vector.broadcast %cst_28 : f32 to vector<32x128xf32>
    %37 = arith.maximumf %35, %36 : vector<32x128xf32>
    %c64_29 = arith.constant 64 : index
    %c128_30 = arith.constant 128 : index
    %38 = vector.load %arg8[%c64_29, %c128_30] : memref<160x1280xf32, #tpu.memory_space<vmem>>, vector<32x128xf32>
    %39 = arith.addf %30, %38 : vector<32x128xf32>
    %cst_31 = arith.constant 0.000000e+00 : f32
    %40 = vector.broadcast %cst_31 : f32 to vector<32x128xf32>
    %41 = arith.maximumf %39, %40 : vector<32x128xf32>
    %c64_32 = arith.constant 64 : index
    %c256_33 = arith.constant 256 : index
    %42 = vector.load %arg8[%c64_32, %c256_33] : memref<160x1280xf32, #tpu.memory_space<vmem>>, vector<32x128xf32>
    %43 = arith.addf %30, %42 : vector<32x128xf32>
    %cst_34 = arith.constant 0.000000e+00 : f32
    %44 = vector.broadcast %cst_34 : f32 to vector<32x128xf32>
    %45 = arith.maximumf %43, %44 : vector<32x128xf32>
    %c64_35 = arith.constant 64 : index
    %c384_36 = arith.constant 384 : index
    %46 = vector.load %arg8[%c64_35, %c384_36] : memref<160x1280xf32, #tpu.memory_space<vmem>>, vector<32x128xf32>
    %47 = arith.addf %30, %46 : vector<32x128xf32>
    %cst_37 = arith.constant 0.000000e+00 : f32
    %48 = vector.broadcast %cst_37 : f32 to vector<32x128xf32>
    %49 = arith.maximumf %47, %48 : vector<32x128xf32>
    %c64_38 = arith.constant 64 : index
    %c512_39 = arith.constant 512 : index
    %50 = vector.load %arg8[%c64_38, %c512_39] : memref<160x1280xf32, #tpu.memory_space<vmem>>, vector<32x128xf32>
    %51 = arith.addf %30, %50 : vector<32x128xf32>
    %cst_40 = arith.constant 0.000000e+00 : f32
    %52 = vector.broadcast %cst_40 : f32 to vector<32x128xf32>
    %53 = arith.maximumf %51, %52 : vector<32x128xf32>
    %54 = arith.addf %37, %41 : vector<32x128xf32>
    %55 = arith.addf %45, %49 : vector<32x128xf32>
    %56 = arith.addf %54, %55 : vector<32x128xf32>
    %57 = arith.addf %56, %53 : vector<32x128xf32>
    %c96_41 = arith.constant 96 : index
    %c128_42 = arith.constant 128 : index
    %58 = vector.load %arg8[%c96_41, %c128_42] : memref<160x1280xf32, #tpu.memory_space<vmem>>, vector<32x128xf32>
    %59 = arith.addf %58, %28 : vector<32x128xf32>
    %c0_43 = arith.constant 0 : index
    %c128_44 = arith.constant 128 : index
    %60 = vector.load %arg8[%c0_43, %c128_44] : memref<160x1280xf32, #tpu.memory_space<vmem>>, vector<32x128xf32>
    %61 = arith.addf %60, %14 : vector<32x128xf32>
    %c64_45 = arith.constant 64 : index
    %c0_46 = arith.constant 0 : index
    %62 = vector.load %arg8[%c64_45, %c0_46] : memref<160x1280xf32, #tpu.memory_space<vmem>>, vector<32x128xf32>
    %63 = arith.addf %59, %62 : vector<32x128xf32>
    %cst_47 = arith.constant 0.000000e+00 : f32
    %64 = vector.broadcast %cst_47 : f32 to vector<32x128xf32>
    %65 = arith.maximumf %63, %64 : vector<32x128xf32>
    %c64_48 = arith.constant 64 : index
    %c128_49 = arith.constant 128 : index
    %66 = vector.load %arg8[%c64_48, %c128_49] : memref<160x1280xf32, #tpu.memory_space<vmem>>, vector<32x128xf32>
    %67 = arith.addf %59, %66 : vector<32x128xf32>
    %68 = arith.addf %67, %61 : vector<32x128xf32>
    %cst_50 = arith.constant 0.000000e+00 : f32
    %69 = vector.broadcast %cst_50 : f32 to vector<32x128xf32>
    %70 = arith.maximumf %68, %69 : vector<32x128xf32>
    %c64_51 = arith.constant 64 : index
    %c256_52 = arith.constant 256 : index
    %71 = vector.load %arg8[%c64_51, %c256_52] : memref<160x1280xf32, #tpu.memory_space<vmem>>, vector<32x128xf32>
    %72 = arith.addf %59, %71 : vector<32x128xf32>
    %cst_53 = arith.constant 0.000000e+00 : f32
    %73 = vector.broadcast %cst_53 : f32 to vector<32x128xf32>
    %74 = arith.maximumf %72, %73 : vector<32x128xf32>
    %c64_54 = arith.constant 64 : index
    %c384_55 = arith.constant 384 : index
    %75 = vector.load %arg8[%c64_54, %c384_55] : memref<160x1280xf32, #tpu.memory_space<vmem>>, vector<32x128xf32>
    %76 = arith.addf %59, %75 : vector<32x128xf32>
    %cst_56 = arith.constant 0.000000e+00 : f32
    %77 = vector.broadcast %cst_56 : f32 to vector<32x128xf32>
    %78 = arith.maximumf %76, %77 : vector<32x128xf32>
    %c64_57 = arith.constant 64 : index
    %c512_58 = arith.constant 512 : index
    %79 = vector.load %arg8[%c64_57, %c512_58] : memref<160x1280xf32, #tpu.memory_space<vmem>>, vector<32x128xf32>
    %80 = arith.addf %59, %79 : vector<32x128xf32>
    %cst_59 = arith.constant 0.000000e+00 : f32
    %81 = vector.broadcast %cst_59 : f32 to vector<32x128xf32>
    %82 = arith.maximumf %80, %81 : vector<32x128xf32>
    %83 = arith.addf %65, %70 : vector<32x128xf32>
    %84 = arith.addf %74, %78 : vector<32x128xf32>
    %85 = arith.addf %83, %84 : vector<32x128xf32>
    %86 = arith.addf %85, %82 : vector<32x128xf32>
    %c96_60 = arith.constant 96 : index
    %c256_61 = arith.constant 256 : index
    %87 = vector.load %arg8[%c96_60, %c256_61] : memref<160x1280xf32, #tpu.memory_space<vmem>>, vector<32x128xf32>
    %88 = arith.addf %87, %28 : vector<32x128xf32>
    %c0_62 = arith.constant 0 : index
    %c256_63 = arith.constant 256 : index
    %89 = vector.load %arg8[%c0_62, %c256_63] : memref<160x1280xf32, #tpu.memory_space<vmem>>, vector<32x128xf32>
    %90 = arith.addf %89, %14 : vector<32x128xf32>
    %c64_64 = arith.constant 64 : index
    %c0_65 = arith.constant 0 : index
    %91 = vector.load %arg8[%c64_64, %c0_65] : memref<160x1280xf32, #tpu.memory_space<vmem>>, vector<32x128xf32>
    %92 = arith.addf %88, %91 : vector<32x128xf32>
    %cst_66 = arith.constant 0.000000e+00 : f32
    %93 = vector.broadcast %cst_66 : f32 to vector<32x128xf32>
    %94 = arith.maximumf %92, %93 : vector<32x128xf32>
    %c64_67 = arith.constant 64 : index
    %c128_68 = arith.constant 128 : index
    %95 = vector.load %arg8[%c64_67, %c128_68] : memref<160x1280xf32, #tpu.memory_space<vmem>>, vector<32x128xf32>
    %96 = arith.addf %88, %95 : vector<32x128xf32>
    %cst_69 = arith.constant 0.000000e+00 : f32
    %97 = vector.broadcast %cst_69 : f32 to vector<32x128xf32>
    %98 = arith.maximumf %96, %97 : vector<32x128xf32>
    %c64_70 = arith.constant 64 : index
    %c256_71 = arith.constant 256 : index
    %99 = vector.load %arg8[%c64_70, %c256_71] : memref<160x1280xf32, #tpu.memory_space<vmem>>, vector<32x128xf32>
    %100 = arith.addf %88, %99 : vector<32x128xf32>
    %101 = arith.addf %100, %90 : vector<32x128xf32>
    %cst_72 = arith.constant 0.000000e+00 : f32
    %102 = vector.broadcast %cst_72 : f32 to vector<32x128xf32>
    %103 = arith.maximumf %101, %102 : vector<32x128xf32>
    %c64_73 = arith.constant 64 : index
    %c384_74 = arith.constant 384 : index
    %104 = vector.load %arg8[%c64_73, %c384_74] : memref<160x1280xf32, #tpu.memory_space<vmem>>, vector<32x128xf32>
    %105 = arith.addf %88, %104 : vector<32x128xf32>
    %cst_75 = arith.constant 0.000000e+00 : f32
    %106 = vector.broadcast %cst_75 : f32 to vector<32x128xf32>
    %107 = arith.maximumf %105, %106 : vector<32x128xf32>
    %c64_76 = arith.constant 64 : index
    %c512_77 = arith.constant 512 : index
    %108 = vector.load %arg8[%c64_76, %c512_77] : memref<160x1280xf32, #tpu.memory_space<vmem>>, vector<32x128xf32>
    %109 = arith.addf %88, %108 : vector<32x128xf32>
    %cst_78 = arith.constant 0.000000e+00 : f32
    %110 = vector.broadcast %cst_78 : f32 to vector<32x128xf32>
    %111 = arith.maximumf %109, %110 : vector<32x128xf32>
    %112 = arith.addf %94, %98 : vector<32x128xf32>
    %113 = arith.addf %103, %107 : vector<32x128xf32>
    %114 = arith.addf %112, %113 : vector<32x128xf32>
    %115 = arith.addf %114, %111 : vector<32x128xf32>
    %c96_79 = arith.constant 96 : index
    %c384_80 = arith.constant 384 : index
    %116 = vector.load %arg8[%c96_79, %c384_80] : memref<160x1280xf32, #tpu.memory_space<vmem>>, vector<32x128xf32>
    %117 = arith.addf %116, %28 : vector<32x128xf32>
    %c0_81 = arith.constant 0 : index
    %c384_82 = arith.constant 384 : index
    %118 = vector.load %arg8[%c0_81, %c384_82] : memref<160x1280xf32, #tpu.memory_space<vmem>>, vector<32x128xf32>
    %119 = arith.addf %118, %14 : vector<32x128xf32>
    %c64_83 = arith.constant 64 : index
    %c0_84 = arith.constant 0 : index
    %120 = vector.load %arg8[%c64_83, %c0_84] : memref<160x1280xf32, #tpu.memory_space<vmem>>, vector<32x128xf32>
    %121 = arith.addf %117, %120 : vector<32x128xf32>
    %cst_85 = arith.constant 0.000000e+00 : f32
    %122 = vector.broadcast %cst_85 : f32 to vector<32x128xf32>
    %123 = arith.maximumf %121, %122 : vector<32x128xf32>
    %c64_86 = arith.constant 64 : index
    %c128_87 = arith.constant 128 : index
    %124 = vector.load %arg8[%c64_86, %c128_87] : memref<160x1280xf32, #tpu.memory_space<vmem>>, vector<32x128xf32>
    %125 = arith.addf %117, %124 : vector<32x128xf32>
    %cst_88 = arith.constant 0.000000e+00 : f32
    %126 = vector.broadcast %cst_88 : f32 to vector<32x128xf32>
    %127 = arith.maximumf %125, %126 : vector<32x128xf32>
    %c64_89 = arith.constant 64 : index
    %c256_90 = arith.constant 256 : index
    %128 = vector.load %arg8[%c64_89, %c256_90] : memref<160x1280xf32, #tpu.memory_space<vmem>>, vector<32x128xf32>
    %129 = arith.addf %117, %128 : vector<32x128xf32>
    %cst_91 = arith.constant 0.000000e+00 : f32
    %130 = vector.broadcast %cst_91 : f32 to vector<32x128xf32>
    %131 = arith.maximumf %129, %130 : vector<32x128xf32>
    %c64_92 = arith.constant 64 : index
    %c384_93 = arith.constant 384 : index
    %132 = vector.load %arg8[%c64_92, %c384_93] : memref<160x1280xf32, #tpu.memory_space<vmem>>, vector<32x128xf32>
    %133 = arith.addf %117, %132 : vector<32x128xf32>
    %134 = arith.addf %133, %119 : vector<32x128xf32>
    %cst_94 = arith.constant 0.000000e+00 : f32
    %135 = vector.broadcast %cst_94 : f32 to vector<32x128xf32>
    %136 = arith.maximumf %134, %135 : vector<32x128xf32>
    %c64_95 = arith.constant 64 : index
    %c512_96 = arith.constant 512 : index
    %137 = vector.load %arg8[%c64_95, %c512_96] : memref<160x1280xf32, #tpu.memory_space<vmem>>, vector<32x128xf32>
    %138 = arith.addf %117, %137 : vector<32x128xf32>
    %cst_97 = arith.constant 0.000000e+00 : f32
    %139 = vector.broadcast %cst_97 : f32 to vector<32x128xf32>
    %140 = arith.maximumf %138, %139 : vector<32x128xf32>
    %141 = arith.addf %123, %127 : vector<32x128xf32>
    %142 = arith.addf %131, %136 : vector<32x128xf32>
    %143 = arith.addf %141, %142 : vector<32x128xf32>
    %144 = arith.addf %143, %140 : vector<32x128xf32>
    %c96_98 = arith.constant 96 : index
    %c512_99 = arith.constant 512 : index
    %145 = vector.load %arg8[%c96_98, %c512_99] : memref<160x1280xf32, #tpu.memory_space<vmem>>, vector<32x128xf32>
    %146 = arith.addf %145, %28 : vector<32x128xf32>
    %c0_100 = arith.constant 0 : index
    %c512_101 = arith.constant 512 : index
    %147 = vector.load %arg8[%c0_100, %c512_101] : memref<160x1280xf32, #tpu.memory_space<vmem>>, vector<32x128xf32>
    %148 = arith.addf %147, %14 : vector<32x128xf32>
    %c64_102 = arith.constant 64 : index
    %c0_103 = arith.constant 0 : index
    %149 = vector.load %arg8[%c64_102, %c0_103] : memref<160x1280xf32, #tpu.memory_space<vmem>>, vector<32x128xf32>
    %150 = arith.addf %146, %149 : vector<32x128xf32>
    %cst_104 = arith.constant 0.000000e+00 : f32
    %151 = vector.broadcast %cst_104 : f32 to vector<32x128xf32>
    %152 = arith.maximumf %150, %151 : vector<32x128xf32>
    %c64_105 = arith.constant 64 : index
    %c128_106 = arith.constant 128 : index
    %153 = vector.load %arg8[%c64_105, %c128_106] : memref<160x1280xf32, #tpu.memory_space<vmem>>, vector<32x128xf32>
    %154 = arith.addf %146, %153 : vector<32x128xf32>
    %cst_107 = arith.constant 0.000000e+00 : f32
    %155 = vector.broadcast %cst_107 : f32 to vector<32x128xf32>
    %156 = arith.maximumf %154, %155 : vector<32x128xf32>
    %c64_108 = arith.constant 64 : index
    %c256_109 = arith.constant 256 : index
    %157 = vector.load %arg8[%c64_108, %c256_109] : memref<160x1280xf32, #tpu.memory_space<vmem>>, vector<32x128xf32>
    %158 = arith.addf %146, %157 : vector<32x128xf32>
    %cst_110 = arith.constant 0.000000e+00 : f32
    %159 = vector.broadcast %cst_110 : f32 to vector<32x128xf32>
    %160 = arith.maximumf %158, %159 : vector<32x128xf32>
    %c64_111 = arith.constant 64 : index
    %c384_112 = arith.constant 384 : index
    %161 = vector.load %arg8[%c64_111, %c384_112] : memref<160x1280xf32, #tpu.memory_space<vmem>>, vector<32x128xf32>
    %162 = arith.addf %146, %161 : vector<32x128xf32>
    %cst_113 = arith.constant 0.000000e+00 : f32
    %163 = vector.broadcast %cst_113 : f32 to vector<32x128xf32>
    %164 = arith.maximumf %162, %163 : vector<32x128xf32>
    %c64_114 = arith.constant 64 : index
    %c512_115 = arith.constant 512 : index
    %165 = vector.load %arg8[%c64_114, %c512_115] : memref<160x1280xf32, #tpu.memory_space<vmem>>, vector<32x128xf32>
    %166 = arith.addf %146, %165 : vector<32x128xf32>
    %167 = arith.addf %166, %148 : vector<32x128xf32>
    %cst_116 = arith.constant 0.000000e+00 : f32
    %168 = vector.broadcast %cst_116 : f32 to vector<32x128xf32>
    %169 = arith.maximumf %167, %168 : vector<32x128xf32>
    %170 = arith.addf %152, %156 : vector<32x128xf32>
    %171 = arith.addf %160, %164 : vector<32x128xf32>
    %172 = arith.addf %170, %171 : vector<32x128xf32>
    %173 = arith.addf %172, %169 : vector<32x128xf32>
    %174 = arith.addf %57, %86 : vector<32x128xf32>
    %175 = arith.addf %115, %144 : vector<32x128xf32>
    %176 = arith.addf %174, %175 : vector<32x128xf32>
    %177 = arith.addf %176, %173 : vector<32x128xf32>
    %c32_117 = arith.constant 32 : index
    %c640 = arith.constant 640 : index
    %178 = vector.load %arg8[%c32_117, %c640] : memref<160x1280xf32, #tpu.memory_space<vmem>>, vector<32x128xf32>
    %c32_118 = arith.constant 32 : index
    %c768 = arith.constant 768 : index
    %179 = vector.load %arg8[%c32_118, %c768] : memref<160x1280xf32, #tpu.memory_space<vmem>>, vector<32x128xf32>
    %180 = arith.addf %178, %179 : vector<32x128xf32>
    %c32_119 = arith.constant 32 : index
    %c896 = arith.constant 896 : index
    %181 = vector.load %arg8[%c32_119, %c896] : memref<160x1280xf32, #tpu.memory_space<vmem>>, vector<32x128xf32>
    %c32_120 = arith.constant 32 : index
    %c1024 = arith.constant 1024 : index
    %182 = vector.load %arg8[%c32_120, %c1024] : memref<160x1280xf32, #tpu.memory_space<vmem>>, vector<32x128xf32>
    %183 = arith.addf %181, %182 : vector<32x128xf32>
    %184 = arith.addf %180, %183 : vector<32x128xf32>
    %c32_121 = arith.constant 32 : index
    %c1152 = arith.constant 1152 : index
    %185 = vector.load %arg8[%c32_121, %c1152] : memref<160x1280xf32, #tpu.memory_space<vmem>>, vector<32x128xf32>
    %186 = arith.addf %184, %185 : vector<32x128xf32>
    %cst_122 = arith.constant 2.000000e-01 : f32
    %187 = vector.broadcast %cst_122 : f32 to vector<32x128xf32>
    %188 = arith.mulf %186, %187 : vector<32x128xf32>
    %c128_123 = arith.constant 128 : index
    %c640_124 = arith.constant 640 : index
    %189 = vector.load %arg8[%c128_123, %c640_124] : memref<160x1280xf32, #tpu.memory_space<vmem>>, vector<32x128xf32>
    %c128_125 = arith.constant 128 : index
    %c768_126 = arith.constant 768 : index
    %190 = vector.load %arg8[%c128_125, %c768_126] : memref<160x1280xf32, #tpu.memory_space<vmem>>, vector<32x128xf32>
    %191 = arith.addf %189, %190 : vector<32x128xf32>
    %c128_127 = arith.constant 128 : index
    %c896_128 = arith.constant 896 : index
    %192 = vector.load %arg8[%c128_127, %c896_128] : memref<160x1280xf32, #tpu.memory_space<vmem>>, vector<32x128xf32>
    %c128_129 = arith.constant 128 : index
    %c1024_130 = arith.constant 1024 : index
    %193 = vector.load %arg8[%c128_129, %c1024_130] : memref<160x1280xf32, #tpu.memory_space<vmem>>, vector<32x128xf32>
    %194 = arith.addf %192, %193 : vector<32x128xf32>
    %195 = arith.addf %191, %194 : vector<32x128xf32>
    %c128_131 = arith.constant 128 : index
    %c1152_132 = arith.constant 1152 : index
    %196 = vector.load %arg8[%c128_131, %c1152_132] : memref<160x1280xf32, #tpu.memory_space<vmem>>, vector<32x128xf32>
    %197 = arith.addf %195, %196 : vector<32x128xf32>
    %cst_133 = arith.constant 2.000000e-01 : f32
    %198 = vector.broadcast %cst_133 : f32 to vector<32x128xf32>
    %199 = arith.mulf %197, %198 : vector<32x128xf32>
    %c0_134 = arith.constant 0 : index
    %c0_135 = arith.constant 0 : index
    %200 = vector.load %arg3[%c0_134, %c0_135] : memref<32x1xf32, #tpu.memory_space<vmem>>, vector<32x1xf32>
    %201 = vector.broadcast %200 : vector<32x1xf32> to vector<32x128xf32>
    %202 = arith.addf %199, %201 : vector<32x128xf32>
    %c96_136 = arith.constant 96 : index
    %c640_137 = arith.constant 640 : index
    %203 = vector.load %arg8[%c96_136, %c640_137] : memref<160x1280xf32, #tpu.memory_space<vmem>>, vector<32x128xf32>
    %204 = arith.addf %203, %202 : vector<32x128xf32>
    %c0_138 = arith.constant 0 : index
    %c640_139 = arith.constant 640 : index
    %205 = vector.load %arg8[%c0_138, %c640_139] : memref<160x1280xf32, #tpu.memory_space<vmem>>, vector<32x128xf32>
    %206 = arith.addf %205, %188 : vector<32x128xf32>
    %c64_140 = arith.constant 64 : index
    %c640_141 = arith.constant 640 : index
    %207 = vector.load %arg8[%c64_140, %c640_141] : memref<160x1280xf32, #tpu.memory_space<vmem>>, vector<32x128xf32>
    %208 = arith.addf %204, %207 : vector<32x128xf32>
    %209 = arith.addf %208, %206 : vector<32x128xf32>
    %cst_142 = arith.constant 0.000000e+00 : f32
    %210 = vector.broadcast %cst_142 : f32 to vector<32x128xf32>
    %211 = arith.maximumf %209, %210 : vector<32x128xf32>
    %c64_143 = arith.constant 64 : index
    %c768_144 = arith.constant 768 : index
    %212 = vector.load %arg8[%c64_143, %c768_144] : memref<160x1280xf32, #tpu.memory_space<vmem>>, vector<32x128xf32>
    %213 = arith.addf %204, %212 : vector<32x128xf32>
    %cst_145 = arith.constant 0.000000e+00 : f32
    %214 = vector.broadcast %cst_145 : f32 to vector<32x128xf32>
    %215 = arith.maximumf %213, %214 : vector<32x128xf32>
    %c64_146 = arith.constant 64 : index
    %c896_147 = arith.constant 896 : index
    %216 = vector.load %arg8[%c64_146, %c896_147] : memref<160x1280xf32, #tpu.memory_space<vmem>>, vector<32x128xf32>
    %217 = arith.addf %204, %216 : vector<32x128xf32>
    %cst_148 = arith.constant 0.000000e+00 : f32
    %218 = vector.broadcast %cst_148 : f32 to vector<32x128xf32>
    %219 = arith.maximumf %217, %218 : vector<32x128xf32>
    %c64_149 = arith.constant 64 : index
    %c1024_150 = arith.constant 1024 : index
    %220 = vector.load %arg8[%c64_149, %c1024_150] : memref<160x1280xf32, #tpu.memory_space<vmem>>, vector<32x128xf32>
    %221 = arith.addf %204, %220 : vector<32x128xf32>
    %cst_151 = arith.constant 0.000000e+00 : f32
    %222 = vector.broadcast %cst_151 : f32 to vector<32x128xf32>
    %223 = arith.maximumf %221, %222 : vector<32x128xf32>
    %c64_152 = arith.constant 64 : index
    %c1152_153 = arith.constant 1152 : index
    %224 = vector.load %arg8[%c64_152, %c1152_153] : memref<160x1280xf32, #tpu.memory_space<vmem>>, vector<32x128xf32>
    %225 = arith.addf %204, %224 : vector<32x128xf32>
    %cst_154 = arith.constant 0.000000e+00 : f32
    %226 = vector.broadcast %cst_154 : f32 to vector<32x128xf32>
    %227 = arith.maximumf %225, %226 : vector<32x128xf32>
    %228 = arith.addf %211, %215 : vector<32x128xf32>
    %229 = arith.addf %219, %223 : vector<32x128xf32>
    %230 = arith.addf %228, %229 : vector<32x128xf32>
    %231 = arith.addf %230, %227 : vector<32x128xf32>
    %c96_155 = arith.constant 96 : index
    %c768_156 = arith.constant 768 : index
    %232 = vector.load %arg8[%c96_155, %c768_156] : memref<160x1280xf32, #tpu.memory_space<vmem>>, vector<32x128xf32>
    %233 = arith.addf %232, %202 : vector<32x128xf32>
    %c0_157 = arith.constant 0 : index
    %c768_158 = arith.constant 768 : index
    %234 = vector.load %arg8[%c0_157, %c768_158] : memref<160x1280xf32, #tpu.memory_space<vmem>>, vector<32x128xf32>
    %235 = arith.addf %234, %188 : vector<32x128xf32>
    %c64_159 = arith.constant 64 : index
    %c640_160 = arith.constant 640 : index
    %236 = vector.load %arg8[%c64_159, %c640_160] : memref<160x1280xf32, #tpu.memory_space<vmem>>, vector<32x128xf32>
    %237 = arith.addf %233, %236 : vector<32x128xf32>
    %cst_161 = arith.constant 0.000000e+00 : f32
    %238 = vector.broadcast %cst_161 : f32 to vector<32x128xf32>
    %239 = arith.maximumf %237, %238 : vector<32x128xf32>
    %c64_162 = arith.constant 64 : index
    %c768_163 = arith.constant 768 : index
    %240 = vector.load %arg8[%c64_162, %c768_163] : memref<160x1280xf32, #tpu.memory_space<vmem>>, vector<32x128xf32>
    %241 = arith.addf %233, %240 : vector<32x128xf32>
    %242 = arith.addf %241, %235 : vector<32x128xf32>
    %cst_164 = arith.constant 0.000000e+00 : f32
    %243 = vector.broadcast %cst_164 : f32 to vector<32x128xf32>
    %244 = arith.maximumf %242, %243 : vector<32x128xf32>
    %c64_165 = arith.constant 64 : index
    %c896_166 = arith.constant 896 : index
    %245 = vector.load %arg8[%c64_165, %c896_166] : memref<160x1280xf32, #tpu.memory_space<vmem>>, vector<32x128xf32>
    %246 = arith.addf %233, %245 : vector<32x128xf32>
    %cst_167 = arith.constant 0.000000e+00 : f32
    %247 = vector.broadcast %cst_167 : f32 to vector<32x128xf32>
    %248 = arith.maximumf %246, %247 : vector<32x128xf32>
    %c64_168 = arith.constant 64 : index
    %c1024_169 = arith.constant 1024 : index
    %249 = vector.load %arg8[%c64_168, %c1024_169] : memref<160x1280xf32, #tpu.memory_space<vmem>>, vector<32x128xf32>
    %250 = arith.addf %233, %249 : vector<32x128xf32>
    %cst_170 = arith.constant 0.000000e+00 : f32
    %251 = vector.broadcast %cst_170 : f32 to vector<32x128xf32>
    %252 = arith.maximumf %250, %251 : vector<32x128xf32>
    %c64_171 = arith.constant 64 : index
    %c1152_172 = arith.constant 1152 : index
    %253 = vector.load %arg8[%c64_171, %c1152_172] : memref<160x1280xf32, #tpu.memory_space<vmem>>, vector<32x128xf32>
    %254 = arith.addf %233, %253 : vector<32x128xf32>
    %cst_173 = arith.constant 0.000000e+00 : f32
    %255 = vector.broadcast %cst_173 : f32 to vector<32x128xf32>
    %256 = arith.maximumf %254, %255 : vector<32x128xf32>
    %257 = arith.addf %239, %244 : vector<32x128xf32>
    %258 = arith.addf %248, %252 : vector<32x128xf32>
    %259 = arith.addf %257, %258 : vector<32x128xf32>
    %260 = arith.addf %259, %256 : vector<32x128xf32>
    %c96_174 = arith.constant 96 : index
    %c896_175 = arith.constant 896 : index
    %261 = vector.load %arg8[%c96_174, %c896_175] : memref<160x1280xf32, #tpu.memory_space<vmem>>, vector<32x128xf32>
    %262 = arith.addf %261, %202 : vector<32x128xf32>
    %c0_176 = arith.constant 0 : index
    %c896_177 = arith.constant 896 : index
    %263 = vector.load %arg8[%c0_176, %c896_177] : memref<160x1280xf32, #tpu.memory_space<vmem>>, vector<32x128xf32>
    %264 = arith.addf %263, %188 : vector<32x128xf32>
    %c64_178 = arith.constant 64 : index
    %c640_179 = arith.constant 640 : index
    %265 = vector.load %arg8[%c64_178, %c640_179] : memref<160x1280xf32, #tpu.memory_space<vmem>>, vector<32x128xf32>
    %266 = arith.addf %262, %265 : vector<32x128xf32>
    %cst_180 = arith.constant 0.000000e+00 : f32
    %267 = vector.broadcast %cst_180 : f32 to vector<32x128xf32>
    %268 = arith.maximumf %266, %267 : vector<32x128xf32>
    %c64_181 = arith.constant 64 : index
    %c768_182 = arith.constant 768 : index
    %269 = vector.load %arg8[%c64_181, %c768_182] : memref<160x1280xf32, #tpu.memory_space<vmem>>, vector<32x128xf32>
    %270 = arith.addf %262, %269 : vector<32x128xf32>
    %cst_183 = arith.constant 0.000000e+00 : f32
    %271 = vector.broadcast %cst_183 : f32 to vector<32x128xf32>
    %272 = arith.maximumf %270, %271 : vector<32x128xf32>
    %c64_184 = arith.constant 64 : index
    %c896_185 = arith.constant 896 : index
    %273 = vector.load %arg8[%c64_184, %c896_185] : memref<160x1280xf32, #tpu.memory_space<vmem>>, vector<32x128xf32>
    %274 = arith.addf %262, %273 : vector<32x128xf32>
    %275 = arith.addf %274, %264 : vector<32x128xf32>
    %cst_186 = arith.constant 0.000000e+00 : f32
    %276 = vector.broadcast %cst_186 : f32 to vector<32x128xf32>
    %277 = arith.maximumf %275, %276 : vector<32x128xf32>
    %c64_187 = arith.constant 64 : index
    %c1024_188 = arith.constant 1024 : index
    %278 = vector.load %arg8[%c64_187, %c1024_188] : memref<160x1280xf32, #tpu.memory_space<vmem>>, vector<32x128xf32>
    %279 = arith.addf %262, %278 : vector<32x128xf32>
    %cst_189 = arith.constant 0.000000e+00 : f32
    %280 = vector.broadcast %cst_189 : f32 to vector<32x128xf32>
    %281 = arith.maximumf %279, %280 : vector<32x128xf32>
    %c64_190 = arith.constant 64 : index
    %c1152_191 = arith.constant 1152 : index
    %282 = vector.load %arg8[%c64_190, %c1152_191] : memref<160x1280xf32, #tpu.memory_space<vmem>>, vector<32x128xf32>
    %283 = arith.addf %262, %282 : vector<32x128xf32>
    %cst_192 = arith.constant 0.000000e+00 : f32
    %284 = vector.broadcast %cst_192 : f32 to vector<32x128xf32>
    %285 = arith.maximumf %283, %284 : vector<32x128xf32>
    %286 = arith.addf %268, %272 : vector<32x128xf32>
    %287 = arith.addf %277, %281 : vector<32x128xf32>
    %288 = arith.addf %286, %287 : vector<32x128xf32>
    %289 = arith.addf %288, %285 : vector<32x128xf32>
    %c96_193 = arith.constant 96 : index
    %c1024_194 = arith.constant 1024 : index
    %290 = vector.load %arg8[%c96_193, %c1024_194] : memref<160x1280xf32, #tpu.memory_space<vmem>>, vector<32x128xf32>
    %291 = arith.addf %290, %202 : vector<32x128xf32>
    %c0_195 = arith.constant 0 : index
    %c1024_196 = arith.constant 1024 : index
    %292 = vector.load %arg8[%c0_195, %c1024_196] : memref<160x1280xf32, #tpu.memory_space<vmem>>, vector<32x128xf32>
    %293 = arith.addf %292, %188 : vector<32x128xf32>
    %c64_197 = arith.constant 64 : index
    %c640_198 = arith.constant 640 : index
    %294 = vector.load %arg8[%c64_197, %c640_198] : memref<160x1280xf32, #tpu.memory_space<vmem>>, vector<32x128xf32>
    %295 = arith.addf %291, %294 : vector<32x128xf32>
    %cst_199 = arith.constant 0.000000e+00 : f32
    %296 = vector.broadcast %cst_199 : f32 to vector<32x128xf32>
    %297 = arith.maximumf %295, %296 : vector<32x128xf32>
    %c64_200 = arith.constant 64 : index
    %c768_201 = arith.constant 768 : index
    %298 = vector.load %arg8[%c64_200, %c768_201] : memref<160x1280xf32, #tpu.memory_space<vmem>>, vector<32x128xf32>
    %299 = arith.addf %291, %298 : vector<32x128xf32>
    %cst_202 = arith.constant 0.000000e+00 : f32
    %300 = vector.broadcast %cst_202 : f32 to vector<32x128xf32>
    %301 = arith.maximumf %299, %300 : vector<32x128xf32>
    %c64_203 = arith.constant 64 : index
    %c896_204 = arith.constant 896 : index
    %302 = vector.load %arg8[%c64_203, %c896_204] : memref<160x1280xf32, #tpu.memory_space<vmem>>, vector<32x128xf32>
    %303 = arith.addf %291, %302 : vector<32x128xf32>
    %cst_205 = arith.constant 0.000000e+00 : f32
    %304 = vector.broadcast %cst_205 : f32 to vector<32x128xf32>
    %305 = arith.maximumf %303, %304 : vector<32x128xf32>
    %c64_206 = arith.constant 64 : index
    %c1024_207 = arith.constant 1024 : index
    %306 = vector.load %arg8[%c64_206, %c1024_207] : memref<160x1280xf32, #tpu.memory_space<vmem>>, vector<32x128xf32>
    %307 = arith.addf %291, %306 : vector<32x128xf32>
    %308 = arith.addf %307, %293 : vector<32x128xf32>
    %cst_208 = arith.constant 0.000000e+00 : f32
    %309 = vector.broadcast %cst_208 : f32 to vector<32x128xf32>
    %310 = arith.maximumf %308, %309 : vector<32x128xf32>
    %c64_209 = arith.constant 64 : index
    %c1152_210 = arith.constant 1152 : index
    %311 = vector.load %arg8[%c64_209, %c1152_210] : memref<160x1280xf32, #tpu.memory_space<vmem>>, vector<32x128xf32>
    %312 = arith.addf %291, %311 : vector<32x128xf32>
    %cst_211 = arith.constant 0.000000e+00 : f32
    %313 = vector.broadcast %cst_211 : f32 to vector<32x128xf32>
    %314 = arith.maximumf %312, %313 : vector<32x128xf32>
    %315 = arith.addf %297, %301 : vector<32x128xf32>
    %316 = arith.addf %305, %310 : vector<32x128xf32>
    %317 = arith.addf %315, %316 : vector<32x128xf32>
    %318 = arith.addf %317, %314 : vector<32x128xf32>
    %c96_212 = arith.constant 96 : index
    %c1152_213 = arith.constant 1152 : index
    %319 = vector.load %arg8[%c96_212, %c1152_213] : memref<160x1280xf32, #tpu.memory_space<vmem>>, vector<32x128xf32>
    %320 = arith.addf %319, %202 : vector<32x128xf32>
    %c0_214 = arith.constant 0 : index
    %c1152_215 = arith.constant 1152 : index
    %321 = vector.load %arg8[%c0_214, %c1152_215] : memref<160x1280xf32, #tpu.memory_space<vmem>>, vector<32x128xf32>
    %322 = arith.addf %321, %188 : vector<32x128xf32>
    %c64_216 = arith.constant 64 : index
    %c640_217 = arith.constant 640 : index
    %323 = vector.load %arg8[%c64_216, %c640_217] : memref<160x1280xf32, #tpu.memory_space<vmem>>, vector<32x128xf32>
    %324 = arith.addf %320, %323 : vector<32x128xf32>
    %cst_218 = arith.constant 0.000000e+00 : f32
    %325 = vector.broadcast %cst_218 : f32 to vector<32x128xf32>
    %326 = arith.maximumf %324, %325 : vector<32x128xf32>
    %c64_219 = arith.constant 64 : index
    %c768_220 = arith.constant 768 : index
    %327 = vector.load %arg8[%c64_219, %c768_220] : memref<160x1280xf32, #tpu.memory_space<vmem>>, vector<32x128xf32>
    %328 = arith.addf %320, %327 : vector<32x128xf32>
    %cst_221 = arith.constant 0.000000e+00 : f32
    %329 = vector.broadcast %cst_221 : f32 to vector<32x128xf32>
    %330 = arith.maximumf %328, %329 : vector<32x128xf32>
    %c64_222 = arith.constant 64 : index
    %c896_223 = arith.constant 896 : index
    %331 = vector.load %arg8[%c64_222, %c896_223] : memref<160x1280xf32, #tpu.memory_space<vmem>>, vector<32x128xf32>
    %332 = arith.addf %320, %331 : vector<32x128xf32>
    %cst_224 = arith.constant 0.000000e+00 : f32
    %333 = vector.broadcast %cst_224 : f32 to vector<32x128xf32>
    %334 = arith.maximumf %332, %333 : vector<32x128xf32>
    %c64_225 = arith.constant 64 : index
    %c1024_226 = arith.constant 1024 : index
    %335 = vector.load %arg8[%c64_225, %c1024_226] : memref<160x1280xf32, #tpu.memory_space<vmem>>, vector<32x128xf32>
    %336 = arith.addf %320, %335 : vector<32x128xf32>
    %cst_227 = arith.constant 0.000000e+00 : f32
    %337 = vector.broadcast %cst_227 : f32 to vector<32x128xf32>
    %338 = arith.maximumf %336, %337 : vector<32x128xf32>
    %c64_228 = arith.constant 64 : index
    %c1152_229 = arith.constant 1152 : index
    %339 = vector.load %arg8[%c64_228, %c1152_229] : memref<160x1280xf32, #tpu.memory_space<vmem>>, vector<32x128xf32>
    %340 = arith.addf %320, %339 : vector<32x128xf32>
    %341 = arith.addf %340, %322 : vector<32x128xf32>
    %cst_230 = arith.constant 0.000000e+00 : f32
    %342 = vector.broadcast %cst_230 : f32 to vector<32x128xf32>
    %343 = arith.maximumf %341, %342 : vector<32x128xf32>
    %344 = arith.addf %326, %330 : vector<32x128xf32>
    %345 = arith.addf %334, %338 : vector<32x128xf32>
    %346 = arith.addf %344, %345 : vector<32x128xf32>
    %347 = arith.addf %346, %343 : vector<32x128xf32>
    %348 = arith.addf %231, %260 : vector<32x128xf32>
    %349 = arith.addf %289, %318 : vector<32x128xf32>
    %350 = arith.addf %348, %349 : vector<32x128xf32>
    %351 = arith.addf %350, %347 : vector<32x128xf32>
    %c0_231 = arith.constant 0 : index
    %c0_232 = arith.constant 0 : index
    %352 = vector.load %arg4[%c0_231, %c0_232] : memref<2x32xf32, #tpu.memory_space<vmem>>, vector<2x32xf32>
    %cst_233 = arith.constant dense<0.000000e+00> : vector<2x128xf32>
    %353 = tpu.matmul %352, %177, %cst_233 {dimension_numbers = #tpu.dot_dimension_numbers<[1], [0], [0], [1], [0, 0, 1, 1], [], []>} : vector<2x32xf32>, vector<32x128xf32>, vector<2x128xf32> -> vector<2x128xf32>
    %c0_234 = arith.constant 0 : index
    %c0_235 = arith.constant 0 : index
    %354 = vector.load %arg5[%c0_234, %c0_235] : memref<2x32xf32, #tpu.memory_space<vmem>>, vector<2x32xf32>
    %cst_236 = arith.constant dense<0.000000e+00> : vector<2x128xf32>
    %355 = tpu.matmul %354, %351, %cst_236 {dimension_numbers = #tpu.dot_dimension_numbers<[1], [0], [0], [1], [0, 0, 1, 1], [], []>} : vector<2x32xf32>, vector<32x128xf32>, vector<2x128xf32> -> vector<2x128xf32>
    %356 = arith.addf %353, %355 : vector<2x128xf32>
    %c0_237 = arith.constant 0 : index
    %c0_238 = arith.constant 0 : index
    %357 = vector.load %arg6[%c0_237, %c0_238] : memref<2x1xf32, #tpu.memory_space<vmem>>, vector<2x1xf32>
    %358 = vector.broadcast %357 : vector<2x1xf32> to vector<2x128xf32>
    %359 = arith.addf %356, %358 : vector<2x128xf32>
    %c0_239 = arith.constant 0 : index
    %c0_240 = arith.constant 0 : index
    %360 = vector.load %arg7[%c0_239, %c0_240] : memref<2x128xf32, #tpu.memory_space<vmem>>, vector<2x128xf32>
    tpu.vector_store %arg7[%c0_239, %c0_240], %359 {strides = array<i32>} : memref<2x128xf32, #tpu.memory_space<vmem>>, vector<2x128xf32>,
    return
  }
  func.func @transform_0(%arg0: i32) -> (i32, i32) {
    %c0_i32 = arith.constant 0 : i32
    %c0_i32_0 = arith.constant 0 : i32
    return %c0_i32, %arg0 : i32, i32
  }
  func.func @transform_1(%arg0: i32) -> (i32, i32) {
    %c0_i32 = arith.constant 0 : i32
    %c0_i32_0 = arith.constant 0 : i32
    %c0_i32_1 = arith.constant 0 : i32
    return %c0_i32, %c0_i32_0 : i32, i32
  }
  func.func @transform_2(%arg0: i32) -> (i32, i32) {
    %c0_i32 = arith.constant 0 : i32
    %c0_i32_0 = arith.constant 0 : i32
    %c0_i32_1 = arith.constant 0 : i32
    return %c0_i32, %c0_i32_0 : i32, i32
  }
  func.func @transform_3(%arg0: i32) -> (i32, i32) {
    %c0_i32 = arith.constant 0 : i32
    %c0_i32_0 = arith.constant 0 : i32
    %c0_i32_1 = arith.constant 0 : i32
    return %c0_i32, %c0_i32_0 : i32, i32
  }
  func.func @transform_4(%arg0: i32) -> (i32, i32) {
    %c0_i32 = arith.constant 0 : i32
    %c0_i32_0 = arith.constant 0 : i32
    %c0_i32_1 = arith.constant 0 : i32
    return %c0_i32, %c0_i32_0 : i32, i32
  }
  func.func @transform_5(%arg0: i32) -> (i32, i32) {
    %c0_i32 = arith.constant 0 : i32
    %c0_i32_0 = arith.constant 0 : i32
    %c0_i32_1 = arith.constant 0 : i32
    return %c0_i32, %c0_i32_0 : i32, i32
  }
  func.func @transform_6(%arg0: i32) -> (i32, i32) {
    %c0_i32 = arith.constant 0 : i32
    %c0_i32_0 = arith.constant 0 : i32
    return %c0_i32, %arg0 : i32, i32
  }
}

</mosaic_0001>

<bundles_post_ra>
// kernel: tpu_custom_call.1
= control target key start
LH: loop header
LB: loop body
LE: loop exit
PB: predicated region body
PF: predicated region fallthrough
CT: control target
= control target key end

     0   :  { %11 = vsyncpa [#allocation4], 0  ;;  %s3882_s0 = inlined_call_operand.hbm [shape: bf16[32,1280], index: 0, kind: input, shape index: {}]   ;;  %s3883_s1 = inlined_call_operand.vmem [shape: bf16[160,32], index: 1, kind: input, shape index: {}]   ;;  %s3884_s2 = inlined_call_operand.vmem [shape: f32[32,1], index: 2, kind: input, shape index: {}]   ;;  %s3885_s3 = inlined_call_operand.vmem [shape: f32[2,32], index: 3, kind: input, shape index: {}]   ;;  %s3886_s4 = inlined_call_operand.vmem [shape: f32[2,32], index: 4, kind: input, shape index: {}]   ;;  %s3887_s5 = inlined_call_operand.vmem [shape: f32[2,1], index: 5, kind: input, shape index: {}]   ;;  %s3888_s6 = inlined_call_operand.hbm [shape: f32[2,128], index: 6, kind: output, shape index: {}]  }
   0x1   :  { %12 = vsyncpa [#allocation5], 0  ;;  %s2531_s21 = smov [#allocation3]  }
   0x2   :  { %s18_s22 = sshll.u32 %s2531_s21, 4  ;;  %s19_s22 = int_to_ptr.vmem [resolvable:$true] %s18_s22 }
   0x3   :  { %s2495_s23 = scalar_lea.vmem %s19_s22, 2560  ;;  %p2500_p1 = scmp.lt.s32.totalorder %s19_s22, %s19_s22 }
   0x4   :  { %p2496_p0 = scmp.ne.s32.totalorder %s19_s22, %s2495_s23  ;;  %p2501_p2 = scmp.lt.s32.totalorder %s2495_s23, %s2495_s23 }
   0x6   :  { %p2502_p3 = por %p2501_p2, %p2500_p1 }
   0x8   :  { %p2503_p4 = pnand %p2502_p3, %p2496_p0 }
   0xa   :  { %2506 = shalt.err (!%p2503_p4)
}
   0xb   :  { %s2532_s24 = smov 640   ;;  %s2533_s25 = smov 40  }
   0xc   :  { %24 = dma.hbm_to_vmem [thread:$0]  %s3882_s0, 2560, %s19_s22, [#allocation4], %s2532_s24, %s2532_s24, %s2533_s25  }
   0xd   :  { %2527 = dma.done.wait [#allocation4], 2560  }
   0xe   :  { %2528 = vsyncadd [#allocation4], 4294964736  ;;  %v2534_v0 = vmov 0   ;;  %v2447_v1 = vld [vmem:[#allocation3 + $0x54] ss:$40 sps:$4 sm:$0xff]   ;;  %v2583_v5 = vld [vmem:[%s3883_s1] sm:$0xff]  }
   0xf   :  { %292 = vmatprep.mubr.bf16.mxu0 %v2534_v0  ;;  %352 = vmatprep.mubr.bf16.mxu1 %v2534_v0  ;;  %v2449_v2 = vld [vmem:[#allocation3 + $0x50] ss:$40 sps:$4 sm:$0xff]   ;;  %v2450_v3 = vld [vmem:[#allocation3 + $0x4] ss:$40 sps:$4 sm:$0xff]   ;;  %v2452_v4 = vld [vmem:[#allocation3] ss:$40 sps:$4 sm:$0xff]  }
  0x10   :  { %2446 = vset.pattern.permute.xlu1 %v2534_v0  ;;  %2445 = vset.pattern.permute.xlu0 %v2534_v0  ;;  %v2588_v6 = vld [vmem:[%s3883_s1 + $0x30] sm:$0xff]   ;;  %vm229_vm0 = vcmask 261120   ;;  %v2461_v7 = vld [vmem:[#allocation3 + $0x58] ss:$40 sps:$4 sm:$0xff]   ;;  %v2463_v8 = vld [vmem:[#allocation3 + $0x5c] ss:$40 sps:$4 sm:$0xff]  }
  0x11   :  { %272 = vmatprep.subr.bf16.mxu0 %v2447_v1  ;;  %2434 = vmatprep.subr.bf16.mxu1 %v2447_v1  ;;  %v2599_v9 = vld [vmem:[%s3883_s1 + $0x8] sm:$0xff]   ;;  %v2604_v11 = vld [vmem:[%s3883_s1 + $0x38] sm:$0xff]   ;;  %v2615_v17 = vld [vmem:[%s3883_s1 + $0x10] sm:$0xff]   ;;  %vm2536_vm1 = vmmov 0   ;;  %s2537_s8 = smov [#allocation6]  }
  0x12   :  { %273 = vmatpush1.bf16.msra.mxu0 %v2449_v2  ;;  %2436 = vmatpush1.bf16.msra.mxu1 %v2449_v2  ;;  %v2466_v10 = vld [vmem:[#allocation3 + $0xc] ss:$40 sps:$4 sm:$0xff]   ;;  %v2464_v12 = vld [vmem:[#allocation3 + $0x8] ss:$40 sps:$4 sm:$0xff]   ;;  %v2620_v19 = vld [vmem:[%s3883_s1 + $0x40] sm:$0xff]   ;;  %s2311_s9 = sshll.u32 %s2537_s8, 4  ;;  %s2312_s9 = int_to_ptr.vmem [resolvable:$true] %s2311_s9 }
  0x13   :  { %274 = vmatprep.subr.bf16.mxu0 %v2450_v3  ;;  %2435 = vmatprep.subr.bf16.mxu1 %v2450_v3  ;;  %v2471_v13 = vld [vmem:[#allocation3 + $0x64] ss:$40 sps:$4 sm:$0xff]   ;;  %v2469_v14 = vld [vmem:[#allocation3 + $0x60] ss:$40 sps:$4 sm:$0xff]   ;;  %v2474_v15 = vld [vmem:[#allocation3 + $0x14] ss:$40 sps:$4 sm:$0xff]   ;;  %p2512_p6 = scmp.lt.s32.totalorder %s2312_s9, %s2312_s9 }
  0x14   :  { %v2477_v16 = vld [vmem:[#allocation3 + $0x6c] ss:$40 sps:$4 sm:$0xff]   ;;  %v2472_v18 = vld [vmem:[#allocation3 + $0x10] ss:$40 sps:$4 sm:$0xff]   ;;  %v2647_v23 = vld [vmem:[%s3883_s1 + $0x20] sm:$0xff]   ;;  %s2507_s10 = scalar_lea.vmem %s2312_s9, 32 }
  0x15   :  { %v2483_v20 = vld [vmem:[#allocation3 + $0x74] ss:$40 sps:$4 sm:$0xff]   ;;  %v2636_v22 = vld [vmem:[%s3883_s1 + $0x48] sm:$0xff]   ;;  %v2478_v26 = vld [vmem:[#allocation3 + $0x18] ss:$40 sps:$4 sm:$0xff]   ;;  %p2508_p5 = scmp.ne.s32.totalorder %s2312_s9, %s2507_s10  ;;  %p2513_p7 = scmp.lt.s32.totalorder %s2507_s10, %s2507_s10 }
  0x16   :  { %275 = vmatpush1.bf16.msra.mxu0 %v2452_v4  ;;  %2437 = vmatpush1.bf16.msra.mxu1 %v2452_v4  ;;  %v2631_v21 = vld [vmem:[%s3883_s1 + $0x18] sm:$0xff]   ;;  %v2475_v24 = vld [vmem:[#allocation3 + $0x68] ss:$40 sps:$4 sm:$0xff]   ;;  %v2486_v29 = vld [vmem:[#allocation3 + $0x24] ss:$40 sps:$4 sm:$0xff]  }
  0x17   :  { %405 = vmatprep.subr.bf16.mxu1 %v2463_v8  ;;  %538 = vmatprep.subr.bf16.mxu0 %v2471_v13  ;;  %v2480_v25 = vld [vmem:[#allocation3 + $0x1c] ss:$40 sps:$4 sm:$0xff]   ;;  %v2658_v27 = vld [vmem:[%s3883_s1 + $0x28] sm:$0xff]   ;;  %v2481_v28 = vld [vmem:[#allocation3 + $0x70] ss:$40 sps:$4 sm:$0xff]   ;;  %p2514_p8 = por %p2513_p7, %p2512_p6 }
  0x18   :  { %v1206_v30 = vld [vmem:[%s3884_s2 + $0x8] sm:$0xff]  ;;  %v1205_v32 = vld [vmem:[%s3884_s2] sm:$0xff]  ;;  %v1208_v33 = vld [vmem:[%s3884_s2 + $0x18] sm:$0xff] }
  0x19   :  { %2350 = vmatmul.mubr.msk.bf16.vlgmr.msra.gmra.mxu0 %vm229_vm0, %v2583_v5  ;;  %2356 = vmatmul.mubr.msk.bf16.vlgmr.msra.gmra.mxu1 %vm229_vm0, %v2588_v6  ;;  %v2484_v31 = vld [vmem:[#allocation3 + $0x20] ss:$40 sps:$4 sm:$0xff]   ;;  %v1207_v34 = vld [vmem:[%s3884_s2 + $0x10] sm:$0xff]  ;;  %p2515_p9 = pnand %p2514_p8, %p2508_p5 }
  0x1a   :  { %302 = vmatprep.mubr.bf16.mxu0 %v2534_v0  ;;  %362 = vmatprep.mubr.bf16.mxu1 %v2534_v0  ;;  %v2297_v35 = vld [vmem:[%s3887_s5] sm:$0x3] }
  0x1b   :  { %406 = vmatpush1.bf16.msra.mxu1 %v2461_v7  ;;  %539 = vmatpush1.bf16.msra.mxu0 %v2469_v14 }
  0x1c   :  { %407 = vmatprep.subr.bf16.mxu1 %v2466_v10  ;;  %540 = vmatprep.subr.bf16.mxu0 %v2474_v15 }
  0x1d   :  { %1216 = vperm.xlu1 %2446, %v1206_v30   ;;  %1226 = vperm.xlu0 %2445, %v1208_v33  }
  0x1f   :  { %408 = vmatpush1.bf16.msra.mxu1 %v2464_v12  ;;  %541 = vmatpush1.bf16.msra.mxu0 %v2472_v18 }
  0x20   :  { %671 = vmatprep.subr.bf16.mxu1 %v2477_v16  ;;  %804 = vmatprep.subr.bf16.mxu0 %v2483_v20 }
  0x21   :  { %2351 = vmatmul.mubr.msk.bf16.gmra.mxu0 %vm229_vm0, %v2599_v9  ;;  %2357 = vmatmul.mubr.msk.bf16.gmra.mxu1 %vm229_vm0, %v2604_v11 }
  0x22   :  { %312 = vmatprep.mubr.bf16.mxu0 %v2534_v0  ;;  %372 = vmatprep.mubr.bf16.mxu1 %v2534_v0 }
  0x23   :  { %1211 = vperm.xlu1 %2446, %v1205_v32   ;;  %1221 = vperm.xlu0 %2445, %v1207_v34  }
  0x27   :  { %2300 = vperm.xlu0 %2445, %v2297_v35  }
  0x29   :  { %2352 = vmatmul.mubr.msk.bf16.gmra.mxu0 %vm229_vm0, %v2615_v17  ;;  %2358 = vmatmul.mubr.msk.bf16.gmra.mxu1 %vm229_vm0, %v2620_v19 }
  0x2a   :  { %322 = vmatprep.mubr.bf16.mxu0 %v2534_v0  ;;  %382 = vmatprep.mubr.bf16.mxu1 %v2534_v0 }
  0x31   :  { %2353 = vmatmul.mubr.msk.bf16.gmra.mxu0 %vm229_vm0, %v2631_v21  ;;  %2359 = vmatmul.mubr.msk.bf16.gmra.mxu1 %vm229_vm0, %v2636_v22 }
  0x32   :  { %332 = vmatprep.mubr.bf16.mxu0 %v2534_v0  ;;  %425 = vmatprep.mubr.bf16.mxu1 %v2534_v0 }
  0x39   :  { %2354 = vmatmul.mubr.msk.bf16.gmra.mxu0 %vm229_vm0, %v2647_v23  ;;  %2360 = vmatmul.mubr.msk.bf16.vlgmr.msra.gmra.mxu1 %vm229_vm0, %v2583_v5 }
  0x3a   :  { %342 = vmatprep.mubr.bf16.mxu0 %v2534_v0  ;;  %435 = vmatprep.mubr.bf16.mxu1 %v2534_v0 }
  0x3b   :  { %672 = vmatpush1.bf16.msra.mxu1 %v2475_v24 }
  0x3c   :  { %673 = vmatprep.subr.bf16.mxu1 %v2480_v25 }
  0x3f   :  { %674 = vmatpush1.bf16.msra.mxu1 %v2478_v26 }
  0x41   :  { %2355 = vmatmul.mubr.msk.bf16.gmra.mxu0 %vm229_vm0, %v2658_v27  ;;  %2361 = vmatmul.mubr.msk.bf16.gmra.mxu1 %vm229_vm0, %v2599_v9 }
  0x42   :  { %445 = vmatprep.mubr.bf16.mxu1 %v2534_v0  ;;  %558 = vmatprep.mubr.bf16.mxu0 %v2534_v0 }
  0x49   :  { %2362 = vmatmul.mubr.msk.bf16.gmra.mxu1 %vm229_vm0, %v2615_v17  ;;  %2370 = vmatmul.mubr.msk.bf16.vlgmr.msra.gmra.mxu0 %vm229_vm0, %v2583_v5 }
  0x4a   :  { %455 = vmatprep.mubr.bf16.mxu1 %v2534_v0  ;;  %568 = vmatprep.mubr.bf16.mxu0 %v2534_v0 }
  0x4b   :  { %805 = vmatpush1.bf16.msra.mxu0 %v2481_v28 }
  0x4c   :  { %806 = vmatprep.subr.bf16.mxu0 %v2486_v29 }
  0x4f   :  { %807 = vmatpush1.bf16.msra.mxu0 %v2484_v31 }
  0x51   :  { %2363 = vmatmul.mubr.msk.bf16.gmra.mxu1 %vm229_vm0, %v2631_v21  ;;  %2371 = vmatmul.mubr.msk.bf16.gmra.mxu0 %vm229_vm0, %v2599_v9 }
  0x52   :  { %465 = vmatprep.mubr.bf16.mxu1 %v2534_v0  ;;  %578 = vmatprep.mubr.bf16.mxu0 %v2534_v0 }
  0x59   :  { %2364 = vmatmul.mubr.msk.bf16.gmra.mxu1 %vm229_vm0, %v2647_v23  ;;  %2372 = vmatmul.mubr.msk.bf16.gmra.mxu0 %vm229_vm0, %v2615_v17 }
  0x5a   :  { %475 = vmatprep.mubr.bf16.mxu1 %v2534_v0  ;;  %588 = vmatprep.mubr.bf16.mxu0 %v2534_v0 }
  0x61   :  { %2365 = vmatmul.mubr.msk.bf16.gmra.mxu1 %vm229_vm0, %v2658_v27  ;;  %2373 = vmatmul.mubr.msk.bf16.gmra.mxu0 %vm229_vm0, %v2631_v21 }
  0x62   :  { %485 = vmatprep.mubr.bf16.mxu1 %v2534_v0  ;;  %598 = vmatprep.mubr.bf16.mxu0 %v2534_v0 }
  0x69   :  { %2366 = vmatmul.mubr.msk.bf16.gmra.mxu1 %vm229_vm0, %v2588_v6  ;;  %2374 = vmatmul.mubr.msk.bf16.gmra.mxu0 %vm229_vm0, %v2647_v23 }
  0x6a   :  { %495 = vmatprep.mubr.bf16.mxu1 %v2534_v0  ;;  %608 = vmatprep.mubr.bf16.mxu0 %v2534_v0 }
  0x71   :  { %2367 = vmatmul.mubr.msk.bf16.gmra.mxu1 %vm229_vm0, %v2604_v11  ;;  %2375 = vmatmul.mubr.msk.bf16.gmra.mxu0 %vm229_vm0, %v2658_v27 }
  0x72   :  { %505 = vmatprep.mubr.bf16.mxu1 %v2534_v0  ;;  %618 = vmatprep.mubr.bf16.mxu0 %v2534_v0 }
  0x79   :  { %2368 = vmatmul.mubr.msk.bf16.gmra.mxu1 %vm229_vm0, %v2620_v19  ;;  %2376 = vmatmul.mubr.msk.bf16.gmra.mxu0 %vm229_vm0, %v2588_v6 }
  0x7a   :  { %515 = vmatprep.mubr.bf16.mxu1 %v2534_v0  ;;  %628 = vmatprep.mubr.bf16.mxu0 %v2534_v0 }
  0x81   :  { %2369 = vmatmul.mubr.msk.bf16.gmra.mxu1 %vm229_vm0, %v2636_v22  ;;  %2377 = vmatmul.mubr.msk.bf16.gmra.mxu0 %vm229_vm0, %v2604_v11 }
  0x82   :  { %638 = vmatprep.mubr.bf16.mxu0 %v2534_v0  ;;  %691 = vmatprep.mubr.bf16.mxu1 %v2534_v0 }
  0x89   :  { %2378 = vmatmul.mubr.msk.bf16.gmra.mxu0 %vm229_vm0, %v2620_v19  ;;  %2380 = vmatmul.mubr.msk.bf16.vlgmr.msra.gmra.mxu1 %vm229_vm0, %v2583_v5 }
  0x8a   :  { %648 = vmatprep.mubr.bf16.mxu0 %v2534_v0  ;;  %701 = vmatprep.mubr.bf16.mxu1 %v2534_v0 }
  0x91   :  { %2379 = vmatmul.mubr.msk.bf16.gmra.mxu0 %vm229_vm0, %v2636_v22  ;;  %2381 = vmatmul.mubr.msk.bf16.gmra.mxu1 %vm229_vm0, %v2599_v9 }
  0x92   :  { %711 = vmatprep.mubr.bf16.mxu1 %v2534_v0  ;;  %824 = vmatprep.mubr.bf16.mxu0 %v2534_v0 }
  0x99   :  { %2382 = vmatmul.mubr.msk.bf16.gmra.mxu1 %vm229_vm0, %v2615_v17  ;;  %2390 = vmatmul.mubr.msk.bf16.vlgmr.msra.gmra.mxu0 %vm229_vm0, %v2583_v5 }
  0x9a   :  { %721 = vmatprep.mubr.bf16.mxu1 %v2534_v0  ;;  %834 = vmatprep.mubr.bf16.mxu0 %v2534_v0 }
  0xa1   :  { %2383 = vmatmul.mubr.msk.bf16.gmra.mxu1 %vm229_vm0, %v2631_v21  ;;  %2391 = vmatmul.mubr.msk.bf16.gmra.mxu0 %vm229_vm0, %v2599_v9 }
  0xa2   :  { %731 = vmatprep.mubr.bf16.mxu1 %v2534_v0  ;;  %844 = vmatprep.mubr.bf16.mxu0 %v2534_v0 }
  0xa9   :  { %2384 = vmatmul.mubr.msk.bf16.gmra.mxu1 %vm229_vm0, %v2647_v23  ;;  %2392 = vmatmul.mubr.msk.bf16.gmra.mxu0 %vm229_vm0, %v2615_v17 }
  0xaa   :  { %741 = vmatprep.mubr.bf16.mxu1 %v2534_v0  ;;  %854 = vmatprep.mubr.bf16.mxu0 %v2534_v0 }
  0xb1   :  { %2385 = vmatmul.mubr.msk.bf16.gmra.mxu1 %vm229_vm0, %v2658_v27  ;;  %2393 = vmatmul.mubr.msk.bf16.gmra.mxu0 %vm229_vm0, %v2631_v21 }
  0xb2   :  { %751 = vmatprep.mubr.bf16.mxu1 %v2534_v0  ;;  %864 = vmatprep.mubr.bf16.mxu0 %v2534_v0 }
  0xb9   :  { %2386 = vmatmul.mubr.msk.bf16.gmra.mxu1 %vm229_vm0, %v2588_v6  ;;  %2394 = vmatmul.mubr.msk.bf16.gmra.mxu0 %vm229_vm0, %v2647_v23 }
  0xba   :  { %761 = vmatprep.mubr.bf16.mxu1 %v2534_v0  ;;  %874 = vmatprep.mubr.bf16.mxu0 %v2534_v0 }
  0xc1   :  { %2387 = vmatmul.mubr.msk.bf16.gmra.mxu1 %vm229_vm0, %v2604_v11  ;;  %2395 = vmatmul.mubr.msk.bf16.gmra.mxu0 %vm229_vm0, %v2658_v27 }
  0xc2   :  { %771 = vmatprep.mubr.bf16.mxu1 %v2534_v0  ;;  %884 = vmatprep.mubr.bf16.mxu0 %v2534_v0 }
  0xc9   :  { %2388 = vmatmul.mubr.msk.bf16.gmra.mxu1 %vm229_vm0, %v2620_v19  ;;  %2396 = vmatmul.mubr.msk.bf16.gmra.mxu0 %vm229_vm0, %v2588_v6 }
  0xca   :  { %781 = vmatprep.mubr.bf16.mxu1 %v2534_v0  ;;  %894 = vmatprep.mubr.bf16.mxu0 %v2534_v0 }
  0xd1   :  { %2389 = vmatmul.mubr.msk.bf16.gmra.mxu1 %vm229_vm0, %v2636_v22  ;;  %2397 = vmatmul.mubr.msk.bf16.gmra.mxu0 %vm229_vm0, %v2604_v11 }
  0xd2   :  { %904 = vmatprep.mubr.bf16.mxu0 %v2534_v0 }
  0xd9   :  { %v2788_v36 = vpop.f32.mrf.mxu0  ;;  %v2790_v37 = vpop.f32.mrf.mxu1  ;;  %2398 = vmatmul.mubr.msk.bf16.gmra.mxu0 %vm229_vm0, %v2620_v19 }
  0xda   :  { %914 = vmatprep.mubr.bf16.mxu0 %v2534_v0 }
  0xdb   :  { %v2795_v38 = vpop.f32.mrf.mxu0  ;;  %v2797_v39 = vpop.f32.mrf.mxu1 }
  0xdd   :  { %v2799_v40 = vpop.f32.mrf.mxu0  ;;  %v2801_v41 = vpop.f32.mrf.mxu1 }
  0xdf   :  { %v2803_v42 = vpop.f32.mrf.mxu0  ;;  %v2805_v43 = vpop.f32.mrf.mxu1 }
  0xe1   :  { %v2807_v44 = vpop.f32.mrf.mxu0  ;;  %v2809_v45 = vpop.f32.mrf.mxu1  ;;  %2399 = vmatmul.mubr.msk.bf16.gmra.mxu0 %vm229_vm0, %v2636_v22 }
  0xe3   :  { %v2813_v46 = vpop.f32.mrf.mxu0  ;;  %v2815_v47 = vpop.f32.mrf.mxu1 }
  0xe5   :  { %v2817_v48 = vpop.f32.mrf.mxu0  ;;  %v2819_v49 = vpop.f32.mrf.mxu1 }
  0xe7   :  { %v2821_v50 = vpop.f32.mrf.mxu0  ;;  %v2823_v51 = vpop.f32.mrf.mxu1 }
  0xe9   :  { %v314_v52 = vpop.f32.mrf.mxu0  ;;  %v374_v53 = vpop.f32.mrf.mxu1 }
  0xeb   :  { %v316_v54 = vpop.f32.mrf.mxu0  ;;  %v376_v55 = vpop.f32.mrf.mxu1 }
  0xec   :  { %v1133_v56 = vadd.f32 %v316_v54, %v314_v52  ;;  %v2825_v57 = vadd.f32 %v376_v55, %v374_v53 }
  0xed   :  { %v318_v58 = vpop.f32.mrf.mxu0  ;;  %v378_v59 = vpop.f32.mrf.mxu1 }
  0xef   :  { %v320_v60 = vpop.f32.mrf.mxu0  ;;  %v380_v61 = vpop.f32.mrf.mxu1 }
  0xf0   :  { %v1134_v62 = vadd.f32 %v320_v60, %v318_v58  ;;  %v2827_v63 = vadd.f32 %v380_v61, %v378_v59 }
  0xf1   :  { %v324_v0 = vpop.f32.mrf.mxu0  ;;  %v384_v1 = vpop.f32.mrf.mxu1 }
  0xf3   :  { %v326_v2 = vpop.f32.mrf.mxu0  ;;  %v386_v3 = vpop.f32.mrf.mxu1 }
  0xf4   :  { %v1135_v4 = vadd.f32 %v326_v2, %v324_v0  ;;  %v2829_v5 = vadd.f32 %v386_v3, %v384_v1 }
  0xf5   :  { %v328_v6 = vpop.f32.mrf.mxu0  ;;  %v388_v7 = vpop.f32.mrf.mxu1 }
  0xf7   :  { %v330_v8 = vpop.f32.mrf.mxu0  ;;  %v390_v9 = vpop.f32.mrf.mxu1 }
  0xf8   :  { %v1136_v10 = vadd.f32 %v330_v8, %v328_v6  ;;  %v2831_v11 = vadd.f32 %v390_v9, %v388_v7 }
  0xf9   :  { %v2833_v12 = vpop.f32.mrf.mxu0  ;;  %v427_v13 = vpop.f32.mrf.mxu1 }
  0xfa   :  { %3958 = vst [vmem:[#allocation9_spill] sm:$0xff] %v2833_v12 }
  0xfb   :  { %v2835_v14 = vpop.f32.mrf.mxu0  ;;  %v429_v15 = vpop.f32.mrf.mxu1 }
  0xfc   :  { %3959 = vst [vmem:[#allocation10_spill] sm:$0xff] %v2835_v14 }
  0xfd   :  { %v2837_v16 = vpop.f32.mrf.mxu0  ;;  %v431_v17 = vpop.f32.mrf.mxu1 }
  0xfe   :  { %3960 = vst [vmem:[#allocation11_spill] sm:$0xff] %v2837_v16 }
  0xff   :  { %v2839_v18 = vpop.f32.mrf.mxu0  ;;  %v433_v19 = vpop.f32.mrf.mxu1 }
 0x100   :  { %3961 = vst [vmem:[#allocation12_spill] sm:$0xff] %v2839_v18 }
 0x101   :  { %v2841_v20 = vpop.f32.mrf.mxu0  ;;  %v437_v21 = vpop.f32.mrf.mxu1 }
 0x102   :  { %3962 = vst [vmem:[#allocation13_spill] sm:$0xff] %v2841_v20 }
 0x103   :  { %v2843_v22 = vpop.f32.mrf.mxu0  ;;  %v439_v23 = vpop.f32.mrf.mxu1 }
 0x104   :  { %3963 = vst [vmem:[#allocation14_spill] sm:$0xff] %v2843_v22 }
 0x105   :  { %v2845_v24 = vpop.f32.mrf.mxu0  ;;  %v441_v25 = vpop.f32.mrf.mxu1 }
 0x107   :  { %v2847_v26 = vpop.f32.mrf.mxu0  ;;  %v443_v27 = vpop.f32.mrf.mxu1 }
 0x108   :  { %3964 = vst [vmem:[#allocation15_spill] sm:$0xff] %v2847_v26  ;;  %v2980_v26 = vpop.permute.xlu0 %1226 }
 0x109   :  { %v447_v28 = vpop.f32.mrf.mxu1  ;;  %v560_v29 = vpop.f32.mrf.mxu0  ;;  %4004 = vst [vmem:[#allocation55_spill] sm:$0xff] %v2980_v26 }
 0x10b   :  { %v449_v30 = vpop.f32.mrf.mxu1  ;;  %v2849_v31 = vpop.f32.mrf.mxu0 }
 0x10c   :  { %3965 = vst [vmem:[#allocation16_spill] sm:$0xff] %v2849_v31  ;;  %v1145_v32 = vadd.f32 %v449_v30, %v447_v28 }
 0x10d   :  { %v451_v33 = vpop.f32.mrf.mxu1  ;;  %v564_v34 = vpop.f32.mrf.mxu0 }
 0x10e   :  { %v1149_v35 = vadd.f32 %v1145_v32, %v1133_v56 }
 0x10f   :  { %v453_v52 = vpop.f32.mrf.mxu1  ;;  %v2851_v53 = vpop.f32.mrf.mxu0 }
 0x110   :  { %3966 = vst [vmem:[#allocation17_spill] sm:$0xff] %v2851_v53  ;;  %v1146_v54 = vadd.f32 %v453_v52, %v451_v33 }
 0x111   :  { %v457_v55 = vpop.f32.mrf.mxu1  ;;  %v570_v58 = vpop.f32.mrf.mxu0 }
 0x112   :  { %v1150_v59 = vadd.f32 %v1146_v54, %v1134_v62 }
 0x113   :  { %v459_v60 = vpop.f32.mrf.mxu1  ;;  %v2853_v61 = vpop.f32.mrf.mxu0 }
 0x114   :  { %3967 = vst [vmem:[#allocation18_spill] sm:$0xff] %v2853_v61  ;;  %v1147_v0 = vadd.f32 %v459_v60, %v457_v55 }
 0x115   :  { %v461_v1 = vpop.f32.mrf.mxu1  ;;  %v574_v2 = vpop.f32.mrf.mxu0 }
 0x116   :  { %v1151_v3 = vadd.f32 %v1147_v0, %v1135_v4 }
 0x117   :  { %v463_v6 = vpop.f32.mrf.mxu1  ;;  %v2855_v7 = vpop.f32.mrf.mxu0 }
 0x118   :  { %3968 = vst [vmem:[#allocation19_spill] sm:$0xff] %v2855_v7  ;;  %v1148_v8 = vadd.f32 %v463_v6, %v461_v1 }
 0x119   :  { %v2857_v9 = vpop.f32.mrf.mxu1  ;;  %v580_v56 = vpop.f32.mrf.mxu0 }
 0x11a   :  { %3969 = vst [vmem:[#allocation20_spill] sm:$0xff] %v2857_v9  ;;  %v1157_v28 = vadd.f32 %v1149_v35, %v580_v56  ;;  %v1152_v30 = vadd.f32 %v1148_v8, %v1136_v10 }
 0x11b   :  { %v2859_v32 = vpop.f32.mrf.mxu1  ;;  %v2861_v33 = vpop.f32.mrf.mxu0 }
 0x11c   :  { %3970 = vst [vmem:[#allocation21_spill] sm:$0xff] %v2859_v32  ;;  %v2863_v62 = vmul.f32 0.2, %v1157_v28 }
 0x11d   :  { %v2865_v52 = vpop.f32.mrf.mxu1  ;;  %v584_v54 = vpop.f32.mrf.mxu0 }
 0x11e   :  { %3971 = vst [vmem:[#allocation22_spill] sm:$0xff] %v2865_v52  ;;  %v2868_v4 = vadd.f32 %v2863_v62, %v427_v13  ;;  %v2871_v55 = vadd.f32 %v2863_v62, %v429_v15  ;;  %v2874_v60 = vadd.f32 %v2863_v62, %v560_v29  ;;  %v1158_v35 = vadd.f32 %v1150_v59, %v584_v54 }
 0x11f   :  { %v2876_v10 = vpop.f32.mrf.mxu1  ;;  %v2878_v0 = vpop.f32.mrf.mxu0 }
 0x120   :  { %3972 = vst [vmem:[#allocation23_spill] sm:$0xff] %v2868_v4  ;;  %3973 = vst [vmem:[#allocation24_spill] sm:$0xff] %v2871_v55  ;;  %v2880_v1 = vmul.f32 0.2, %v1158_v35 }
 0x121   :  { %3974 = vst [vmem:[#allocation25_spill] sm:$0xff] %v2874_v60  ;;  %3975 = vst [vmem:[#allocation26_spill] sm:$0xff] %v2876_v10  ;;  %v2882_v6 = vpop.f32.mrf.mxu1  ;;  %v590_v8 = vpop.f32.mrf.mxu0 }
 0x122   :  { %v1159_v56 = vadd.f32 %v1151_v3, %v590_v8  ;;  %v2885_v13 = vadd.f32 %v2880_v1, %v431_v17  ;;  %v2888_v15 = vadd.f32 %v2880_v1, %v433_v19  ;;  %v2895_v59 = vadd.f32 %v2880_v1, %v564_v34 }
 0x123   :  { %v2890_v28 = vpop.f32.mrf.mxu1  ;;  %v2892_v29 = vpop.f32.mrf.mxu0 }
 0x124   :  { %3976 = vst [vmem:[#allocation27_spill] sm:$0xff] %v2885_v13  ;;  %3977 = vst [vmem:[#allocation28_spill] sm:$0xff] %v2888_v15  ;;  %v2897_v54 = vmul.f32 0.2, %v1159_v56 }
 0x125   :  { %3978 = vst [vmem:[#allocation29_spill] sm:$0xff] %v2892_v29  ;;  %3979 = vst [vmem:[#allocation30_spill] sm:$0xff] %v2895_v59  ;;  %v2899_v35 = vpop.f32.mrf.mxu1  ;;  %v594_v60 = vpop.f32.mrf.mxu0 }
 0x126   :  { %3980 = vst [vmem:[#allocation31_spill] sm:$0xff] %v2899_v35  ;;  %v2902_v3 = vadd.f32 %v2897_v54, %v437_v21  ;;  %v2905_v17 = vadd.f32 %v2897_v54, %v439_v23  ;;  %v2908_v19 = vadd.f32 %v2897_v54, %v570_v58  ;;  %v1160_v8 = vadd.f32 %v1152_v30, %v594_v60 }
 0x127   :  { %v2910_v55 = vpop.f32.mrf.mxu1  ;;  %v2912_v4 = vpop.f32.mrf.mxu0 }
 0x128   :  { %3981 = vst [vmem:[#allocation32_spill] sm:$0xff] %v2902_v3  ;;  %3982 = vst [vmem:[#allocation33_spill] sm:$0xff] %v2905_v17  ;;  %v2914_v34 = vmul.f32 0.2, %v1160_v8 }
 0x129   :  { %3983 = vst [vmem:[#allocation34_spill] sm:$0xff] %v2908_v19  ;;  %3984 = vst [vmem:[#allocation35_spill] sm:$0xff] %v2910_v55  ;;  %v487_v56 = vpop.f32.mrf.mxu1  ;;  %v2916_v32 = vpop.f32.mrf.mxu0 }
 0x12a   :  { %3985 = vst [vmem:[#allocation36_spill] sm:$0xff] %v2912_v4  ;;  %3986 = vst [vmem:[#allocation37_spill] sm:$0xff] %v2916_v32  ;;  %v2919_v9 = vadd.f32 %v2914_v34, %v441_v25  ;;  %v2922_v21 = vadd.f32 %v2914_v34, %v443_v27  ;;  %v2927_v58 = vadd.f32 %v2914_v34, %v574_v2  ;;  %v2964_v55 = vpop.permute.xlu1 %1216 }
 0x12b   :  { %v489_v23 = vpop.f32.mrf.mxu1  ;;  %v2924_v14 = vpop.f32.mrf.mxu0  ;;  %3999 = vst [vmem:[#allocation50_spill] sm:$0xff] %v2964_v55 }
 0x12c   :  { %3987 = vst [vmem:[#allocation38_spill] sm:$0xff] %v2919_v9  ;;  %3988 = vst [vmem:[#allocation39_spill] sm:$0xff] %v2922_v21 }
 0x12d   :  { %3989 = vst [vmem:[#allocation40_spill] sm:$0xff] %v2924_v14  ;;  %3990 = vst [vmem:[#allocation41_spill] sm:$0xff] %v2927_v58  ;;  %v2929_v30 = vpop.f32.mrf.mxu1  ;;  %v2931_v60 = vpop.f32.mrf.mxu0  ;;  %v3898_v14 = vmov 0.0  }
 0x12e   :  { %3991 = vst [vmem:[#allocation42_spill] sm:$0xff] %v2931_v60  ;;  %2412 = vmatprep.subr.mxu1 %v3898_v14 }
 0x12f   :  { %v2933_v8 = vpop.f32.mrf.mxu1  ;;  %v2935_v12 = vpop.f32.mrf.mxu0 }
 0x130   :  { %3992 = vst [vmem:[#allocation43_spill] sm:$0xff] %v2935_v12 }
 0x131   :  { %v2937_v32 = vpop.f32.mrf.mxu1  ;;  %v2939_v25 = vpop.f32.mrf.mxu0 }
 0x133   :  { %v2941_v27 = vpop.f32.mrf.mxu1  ;;  %v2943_v59 = vpop.f32.mrf.mxu0 }
 0x134   :  { %3993 = vst [vmem:[#allocation44_spill] sm:$0xff] %v2943_v59 }
 0x135   :  { %v2946_v2 = vpop.f32.mrf.mxu1  ;;  %v2948_v15 = vpop.f32.mrf.mxu0 }
 0x136   :  { %3994 = vst [vmem:[#allocation45_spill] sm:$0xff] %v2948_v15 }
 0x137   :  { %v2950_v13 = vpop.f32.mrf.mxu1  ;;  %v2952_v7 = vpop.f32.mrf.mxu0 }
 0x138   :  { %3995 = vst [vmem:[#allocation46_spill] sm:$0xff] %v2952_v7 }
 0x139   :  { %v507_v12 = vpop.f32.mrf.mxu1  ;;  %v620_v60 = vpop.f32.mrf.mxu0 }
 0x13b   :  { %v509_v19 = vpop.f32.mrf.mxu1  ;;  %v2954_v17 = vpop.f32.mrf.mxu0 }
 0x13c   :  { %3996 = vst [vmem:[#allocation47_spill] sm:$0xff] %v2954_v17  ;;  %v1185_v3 = vadd.f32 %v509_v19, %v507_v12 }
 0x13d   :  { %v511_v61 = vpop.f32.mrf.mxu1  ;;  %v624_v53 = vpop.f32.mrf.mxu0 }
 0x13e   :  { %v1189_v59 = vadd.f32 %v1185_v3, %v2825_v57 }
 0x13f   :  { %v513_v58 = vpop.f32.mrf.mxu1  ;;  %v2957_v14 = vpop.f32.mrf.mxu0 }
 0x140   :  { %3997 = vst [vmem:[#allocation48_spill] sm:$0xff] %v2957_v14  ;;  %v1186_v31 = vadd.f32 %v513_v58, %v511_v61 }
 0x141   :  { %v517_v21 = vpop.f32.mrf.mxu1  ;;  %v2959_v9 = vpop.f32.mrf.mxu0 }
 0x142   :  { %v1190_v4 = vadd.f32 %v1186_v31, %v2827_v63  ;;  %v2973_v63 = vpop.permute.xlu1 %1211 }
 0x143   :  { %v519_v7 = vpop.f32.mrf.mxu1  ;;  %v2962_v29 = vpop.f32.mrf.mxu0  ;;  %4001 = vst [vmem:[#allocation52_spill] sm:$0xff] %v2973_v63 }
 0x144   :  { %3998 = vst [vmem:[#allocation49_spill] sm:$0xff] %v2962_v29  ;;  %v1187_v15 = vadd.f32 %v519_v7, %v517_v21 }
 0x145   :  { %v521_v12 = vpop.f32.mrf.mxu1  ;;  %v2966_v19 = vpop.f32.mrf.mxu0 }
 0x146   :  { %v1191_v57 = vadd.f32 %v1187_v15, %v2829_v5 }
 0x147   :  { %v523_v3 = vpop.f32.mrf.mxu1  ;;  %v2969_v17 = vpop.f32.mrf.mxu0 }
 0x148   :  { %4000 = vst [vmem:[#allocation51_spill] sm:$0xff] %v2969_v17  ;;  %v1188_v61 = vadd.f32 %v523_v3, %v521_v12 }
 0x149   :  { %v640_v58 = vpop.f32.mrf.mxu0  ;;  %v2971_v14 = vpop.f32.mrf.mxu1 }
 0x14a   :  { %v1197_v35 = vadd.f32 %v1189_v59, %v640_v58  ;;  %v1192_v31 = vadd.f32 %v1188_v61, %v2831_v11 }
 0x14b   :  { %v2976_v7 = vpop.f32.mrf.mxu0  ;;  %v2978_v21 = vpop.f32.mrf.mxu1 }
 0x14c   :  { %4002 = vst [vmem:[#allocation53_spill] sm:$0xff] %v2976_v7  ;;  %4003 = vst [vmem:[#allocation54_spill] sm:$0xff] %v2978_v21  ;;  %v1201_v29 = vmul.f32 0.2, %v1197_v35 }
 0x14d   :  { %v644_v5 = vpop.f32.mrf.mxu0  ;;  %v2982_v15 = vpop.f32.mrf.mxu1 }
 0x14e   :  { %4005 = vst [vmem:[#allocation56_spill] sm:$0xff] %v2982_v15  ;;  %v1229_v12 = vadd.f32 %v2973_v63, %v1201_v29  ;;  %v1198_v3 = vadd.f32 %v1190_v4, %v644_v5  ;;  %v2999_v15 = vadd.f32 %v2863_v62, %v2788_v36  ;;  %v3003_v4 = vadd.f32 %v2863_v62, %v2795_v38  ;;  %v3005_v5 = vpop.permute.xlu0 %1221 }
 0x14f   :  { %v2985_v17 = vpop.f32.mrf.mxu0  ;;  %v2987_v59 = vpop.f32.mrf.mxu1  ;;  %4012 = vst [vmem:[#allocation63_spill] sm:$0xff] %v3005_v5  ;;  %v3022_v38 = vadd.f32 %v2897_v54, %v2813_v46 }
 0x150   :  { %4006 = vst [vmem:[#allocation57_spill] sm:$0xff] %v2985_v17  ;;  %v2989_v58 = vadd.f32 %v1229_v12, %v487_v56  ;;  %v2991_v11 = vadd.f32 %v1229_v12, %v489_v23  ;;  %v2993_v61 = vadd.f32 %v1229_v12, %v620_v60  ;;  %v1202_v7 = vmul.f32 0.2, %v1198_v3  ;;  %4010 = vst [vmem:[#allocation61_spill] sm:$0xff] %v2999_v15  ;;  %v4032_v15 = vld [vmem:[#allocation15_spill] sm:$0xff] }
 0x151   :  { %v650_v35 = vpop.f32.mrf.mxu0  ;;  %v2995_v21 = vpop.f32.mrf.mxu1  ;;  %4011 = vst [vmem:[#allocation62_spill] sm:$0xff] %v3003_v4  ;;  %v1246_v56 = vadd.f32 %v2880_v1, %v2799_v40  ;;  %v3011_v23 = vadd.f32 %v2880_v1, %v2803_v42  ;;  %v1247_v60 = vadd.f32 %v2897_v54, %v2807_v44  ;;  %v3026_v40 = vadd.f32 %v2914_v34, %v2817_v48 }
 0x152   :  { %4007 = vst [vmem:[#allocation58_spill] sm:$0xff] %v2989_v58  ;;  %4008 = vst [vmem:[#allocation59_spill] sm:$0xff] %v2991_v11  ;;  %v1199_v29 = vadd.f32 %v1191_v57, %v650_v35  ;;  %v1230_v36 = vadd.f32 %v2964_v55, %v1202_v7  ;;  %v3030_v42 = vadd.f32 %v2914_v34, %v2821_v50 }
 0x153   :  { %4009 = vst [vmem:[#allocation60_spill] sm:$0xff] %v2993_v61  ;;  %4013 = vst [vmem:[#allocation64_spill] sm:$0xff] %v3011_v23  ;;  %v3016_v3 = vpop.f32.mrf.mxu0  ;;  %v3018_v61 = vpop.f32.mrf.mxu1  ;;  %v3033_v44 = vadd.f32 %v1229_v12, %v2790_v37  ;;  %v3047_v7 = vadd.f32 %v1229_v12, %v2797_v39 }
 0x154   :  { %4014 = vst [vmem:[#allocation65_spill] sm:$0xff] %v3016_v3  ;;  %v1203_v62 = vmul.f32 0.2, %v1199_v29  ;;  %v3036_v1 = vadd.f32 %v1230_v36, %v2801_v41  ;;  %v3039_v57 = vadd.f32 %v1230_v36, %v2929_v30  ;;  %v3042_v46 = vadd.f32 %v1230_v36, %v2933_v8 }
 0x155   :  { %4015 = vst [vmem:[#allocation66_spill] sm:$0xff] %v3033_v44  ;;  %v654_v54 = vpop.f32.mrf.mxu0  ;;  %v3044_v48 = vpop.f32.mrf.mxu1  ;;  %4020 = vst [vmem:[#allocation71_spill] sm:$0xff] %v3047_v7  ;;  %v3049_v50 = vadd.f32 %v1230_v36, %v624_v53  ;;  %v3053_v41 = vadd.f32 %v1230_v36, %v2805_v43  ;;  %v4033_v44 = vld [vmem:[#allocation31_spill] sm:$0xff] }
 0x156   :  { %4016 = vst [vmem:[#allocation67_spill] sm:$0xff] %v3036_v1  ;;  %4017 = vst [vmem:[#allocation68_spill] sm:$0xff] %v3039_v57  ;;  %v1231_v37 = vadd.f32 %v3005_v5, %v1203_v62  ;;  %v1200_v34 = vadd.f32 %v1192_v31, %v654_v54  ;;  %v1254_v8 = vadd.f32 %v3036_v1, %v2837_v16 }
 0x157   :  { %4018 = vst [vmem:[#allocation69_spill] sm:$0xff] %v3042_v46  ;;  %4019 = vst [vmem:[#allocation70_spill] sm:$0xff] %v3044_v48  ;;  %v3055_v35 = vpop.f32.mrf.mxu0  ;;  %v3057_v30 = vpop.f32.mrf.mxu1  ;;  %v3063_v29 = vadd.f32 %v3036_v1, %v2839_v18  ;;  %v3067_v39 = vadd.f32 %v3036_v1, %v2865_v52 }
 0x158   :  { %4021 = vst [vmem:[#allocation72_spill] sm:$0xff] %v3049_v50  ;;  %4022 = vst [vmem:[#allocation73_spill] sm:$0xff] %v3053_v41  ;;  %v1239_v53 = vadd.f32 %v1231_v37, %v2809_v45  ;;  %v3071_v43 = vadd.f32 %v1231_v37, %v2815_v47  ;;  %v3074_v31 = vadd.f32 %v1231_v37, %v2937_v32  ;;  %v1204_v62 = vmul.f32 0.2, %v1200_v34  ;;  %v4036_v41 = vld [vmem:[#allocation29_spill] sm:$0xff] }
 0x159   :  { %4023 = vst [vmem:[#allocation74_spill] sm:$0xff] %v3055_v35  ;;  %4024 = vst [vmem:[#allocation75_spill] sm:$0xff] %v3057_v30  ;;  %v3077_v12 = vadd.f32 %v1231_v37, %v2941_v27  ;;  %v3080_v36 = vadd.f32 %v1231_v37, %v2959_v9  ;;  %v713_v54 = vpop.f32.mrf.mxu1  ;;  %v3082_v11 = vpop.f32.mrf.mxu0  ;;  %v3084_v58 = vadd.f32 %v1254_v8, %v1246_v56 }
 0x15a   :  { %4025 = vst [vmem:[#allocation76_spill] sm:$0xff] %v3063_v29  ;;  %4026 = vst [vmem:[#allocation77_spill] sm:$0xff] %v3067_v39  ;;  %v3088_v45 = vadd.f32 %v3036_v1, %v2876_v10  ;;  %v3091_v47 = vadd.f32 %v713_v54, %v2861_v33  ;;  %v1255_v32 = vadd.f32 %v1239_v53, %v2841_v20 }
 0x15b   :  { %4027 = vst [vmem:[#allocation78_spill] sm:$0xff] %v3074_v31  ;;  %4028 = vst [vmem:[#allocation79_spill] sm:$0xff] %v3077_v12  ;;  %v3095_v27 = vadd.f32 %v1239_v53, %v2843_v22  ;;  %v3098_v9 = vadd.f32 %v1239_v53, %v2882_v6  ;;  %v1232_v37 = vadd.f32 %v2980_v26, %v1204_v62  ;;  %v3101_v34 = vpop.f32.mrf.mxu1  ;;  %v3103_v56 = vpop.f32.mrf.mxu0 }
 0x15c   :  { %4029 = vst [vmem:[#allocation80_spill] sm:$0xff] %v3080_v36  ;;  %4030 = vst [vmem:[#allocation81_spill] sm:$0xff] %v3084_v58  ;;  %v3106_v8 = vadd.f32 %v1239_v53, %v2890_v28  ;;  %v3109_v33 = vadd.f32 %v1239_v53, %v2939_v25  ;;  %v3112_v4 = vadd.f32 %v1255_v32, %v1247_v60 }
 0x15d   :  { %4031 = vst [vmem:[#allocation82_spill] sm:$0xff] %v3088_v45  ;;  %v3118_v62 = vadd.f32 %v3071_v43, %v2841_v20  ;;  %v1240_v26 = vadd.f32 %v1232_v37, %v2819_v49  ;;  %v1336_v55 = vadd.f32 %v1232_v37, %v2823_v51  ;;  %v1412_v63 = vadd.f32 %v1232_v37, %v2946_v2  ;;  %v717_v54 = vpop.f32.mrf.mxu1  ;;  %v3126_v60 = vpop.f32.mrf.mxu0 }
 0x15e   :  { %v3124_v53 = vadd.f32 %v1232_v37, %v2950_v13  ;;  %v3129_v32 = vadd.f32 %v1232_v37, %v2966_v19  ;;  %v3132_v5 = vadd.f32 %v717_v54, %v2878_v0  ;;  %v3137_v49 = vadd.f32 %v3071_v43, %v2843_v22  ;;  %v4034_v37 = vld [vmem:[#allocation35_spill] sm:$0xff]  ;;  %v4035_v0 = vld [vmem:[#allocation45_spill] sm:$0xff] }
 0x15f   :  { %v3139_v51 = vpop.f32.mrf.mxu1  ;;  %v3141_v2 = vpop.f32.mrf.mxu0  ;;  %v1256_v13 = vadd.f32 %v1240_v26, %v2845_v24  ;;  %v1272_v35 = vadd.f32 %v1240_v26, %v4032_v15  ;;  %v1284_v19 = vadd.f32 %v1240_v26, %v4033_v44  ;;  %v1296_v50 = vadd.f32 %v1240_v26, %v4034_v37 }
 0x160   :  { %v1308_v54 = vadd.f32 %v1240_v26, %v4035_v0  ;;  %v1348_v7 = vadd.f32 %v1336_v55, %v2845_v24  ;;  %v1356_v46 = vadd.f32 %v1336_v55, %v4032_v15  ;;  %v1368_v3 = vadd.f32 %v1336_v55, %v4033_v44 }
 0x161   :  { %v723_v17 = vpop.f32.mrf.mxu1  ;;  %v3151_v57 = vpop.f32.mrf.mxu0  ;;  %v1260_v10 = vadd.f32 %v1256_v13, %v3026_v40  ;;  %v1288_v23 = vmax.f32 %v1284_v19, 0.0  ;;  %v1300_v52 = vmax.f32 %v1296_v50, 0.0  ;;  %v1276_v29 = vmax.f32 %v1272_v35, 0.0 }
 0x162   :  { %v3156_v16 = vadd.f32 %v723_v17, %v4036_v41  ;;  %v1352_v26 = vmax.f32 %v1348_v7, 0.0  ;;  %v1360_v1 = vadd.f32 %v1356_v46, %v3030_v42  ;;  %v1372_v12 = vmax.f32 %v1368_v3, 0.0 }
 0x163   :  { %v3159_v45 = vpop.f32.mrf.mxu1  ;;  %v3161_v39 = vpop.f32.mrf.mxu0  ;;  %v1264_v58 = vmax.f32 %v1260_v10, 0.0  ;;  %v1320_v36 = vadd.f32 %v1300_v52, %v1288_v23  ;;  %v1376_v40 = vadd.f32 %v1336_v55, %v4034_v37  ;;  %v1384_v50 = vadd.f32 %v1336_v55, %v4035_v0  ;;  %v4038_v52 = vld [vmem:[#allocation36_spill] sm:$0xff] }
 0x164   :  { %v1364_v13 = vmax.f32 %v1360_v1, 0.0  ;;  %v1424_v19 = vadd.f32 %v1412_v63, %v2845_v24  ;;  %v1432_v17 = vadd.f32 %v1412_v63, %v4032_v15  ;;  %v1440_v35 = vadd.f32 %v1412_v63, %v4033_v44 }
 0x165   :  { %v727_v41 = vpop.f32.mrf.mxu1  ;;  %v3167_v7 = vpop.f32.mrf.mxu0  ;;  %v1316_v42 = vadd.f32 %v1276_v29, %v1264_v58  ;;  %v1380_v46 = vmax.f32 %v1376_v40, 0.0  ;;  %v1452_v10 = vadd.f32 %v1412_v63, %v4034_v37  ;;  %v1312_v3 = vmax.f32 %v1308_v54, 0.0 }
 0x166   :  { %4037 = vst [vmem:[#allocation15_spill] sm:$0xff] %v3167_v7  ;;  %v3172_v23 = vadd.f32 %v727_v41, %v4038_v52  ;;  %v1392_v1 = vadd.f32 %v1364_v13, %v1352_v26  ;;  %v1428_v18 = vmax.f32 %v1424_v19, 0.0  ;;  %v1436_v31 = vmax.f32 %v1432_v17, 0.0  ;;  %v4040_v7 = vld [vmem:[#allocation38_spill] sm:$0xff] }
 0x167   :  { %v3174_v55 = vpop.f32.mrf.mxu1  ;;  %v3176_v30 = vpop.f32.mrf.mxu0  ;;  %v1324_v48 = vadd.f32 %v1320_v36, %v1316_v42  ;;  %v1396_v22 = vadd.f32 %v1380_v46, %v1372_v12  ;;  %v1444_v58 = vadd.f32 %v1440_v35, %v4040_v7  ;;  %v1388_v29 = vmax.f32 %v1384_v50, 0.0 }
 0x168   :  { %4039 = vst [vmem:[#allocation31_spill] sm:$0xff] %v3176_v30  ;;  %v1460_v40 = vadd.f32 %v1412_v63, %v4035_v0  ;;  %v1500_v20 = vadd.f32 %v3124_v53, %v2845_v24  ;;  %v1508_v54 = vadd.f32 %v3124_v53, %v4032_v15  ;;  %v1456_v36 = vmax.f32 %v1452_v10, 0.0 }
 0x169   :  { %v3184_v26 = vpop.f32.mrf.mxu1  ;;  %v846_v13 = vpop.f32.mrf.mxu0  ;;  %v1328_v19 = vadd.f32 %v1324_v48, %v1312_v3  ;;  %v1400_v41 = vadd.f32 %v1396_v22, %v1392_v1  ;;  %v1448_v52 = vmax.f32 %v1444_v58, 0.0  ;;  %v1468_v17 = vadd.f32 %v1436_v31, %v1428_v18  ;;  %v4043_v3 = vld [vmem:[#allocation39_spill] sm:$0xff] }
 0x16a   :  { %4041 = vst [vmem:[#allocation35_spill] sm:$0xff] %v3184_v26  ;;  %v1669_v12 = vadd.f32 %v846_v13, %v3101_v34  ;;  %v1504_v7 = vmax.f32 %v1500_v20, 0.0  ;;  %v1512_v50 = vmax.f32 %v1508_v54, 0.0  ;;  %v1516_v30 = vadd.f32 %v3124_v53, %v4033_v44 }
 0x16b   :  { %v3187_v42 = vpop.f32.mrf.mxu1  ;;  %v848_v63 = vpop.f32.mrf.mxu0  ;;  %v1404_v46 = vadd.f32 %v1400_v41, %v1388_v29  ;;  %v1472_v35 = vadd.f32 %v1456_v36, %v1448_v52  ;;  %v1524_v26 = vadd.f32 %v3124_v53, %v4034_v37  ;;  %v1464_v48 = vmax.f32 %v1460_v40, 0.0 }
 0x16c   :  { %4042 = vst [vmem:[#allocation45_spill] sm:$0xff] %v3187_v42  ;;  %v1673_v22 = vadd.f32 %v1669_v12, %v3091_v47  ;;  %v1536_v34 = vadd.f32 %v3124_v53, %v4035_v0  ;;  %v1576_v18 = vadd.f32 %v3129_v32, %v2845_v24  ;;  %v1544_v58 = vadd.f32 %v1512_v50, %v1504_v7 }
 0x16d   :  { %v3198_v20 = vpop.f32.mrf.mxu1  ;;  %v850_v31 = vpop.f32.mrf.mxu0  ;;  %v1476_v10 = vadd.f32 %v1472_v35, %v1468_v17  ;;  %v1528_v1 = vadd.f32 %v1524_v26, %v4043_v3  ;;  %v1584_v29 = vadd.f32 %v3129_v32, %v4032_v15  ;;  %v1520_v40 = vmax.f32 %v1516_v30, 0.0 }
 0x16e   :  { %v1681_v54 = vadd.f32 %v1673_v22, %v848_v63  ;;  %v1670_v47 = vadd.f32 %v850_v31, %v3139_v51  ;;  %v1580_v13 = vmax.f32 %v1576_v18, 0.0  ;;  %v1592_v12 = vadd.f32 %v3129_v32, %v4033_v44  ;;  %v4045_v44 = vld [vmem:[#allocation54_spill] sm:$0xff] }
 0x16f   :  { %v3204_v41 = vpop.f32.mrf.mxu1  ;;  %v852_v53 = vpop.f32.mrf.mxu0  ;;  %v1480_v52 = vadd.f32 %v1476_v10, %v1464_v48  ;;  %v1532_v24 = vmax.f32 %v1528_v1, 0.0  ;;  %v1588_v36 = vmax.f32 %v1584_v29, 0.0  ;;  %v1600_v15 = vadd.f32 %v3129_v32, %v4034_v37  ;;  %v4050_v1 = vld [vmem:[#allocation41_spill] sm:$0xff] }
 0x170   :  { %v1685_v17 = vmul.f32 0.2, %v1681_v54  ;;  %v1674_v26 = vadd.f32 %v1670_v47, %v3132_v5  ;;  %v1608_v51 = vadd.f32 %v3129_v32, %v4035_v0  ;;  %v1540_v50 = vmax.f32 %v1536_v34, 0.0 }
 0x171   :  { %v3213_v30 = vpop.f32.mrf.mxu1  ;;  %v856_v7 = vpop.f32.mrf.mxu0  ;;  %v1548_v63 = vadd.f32 %v1532_v24, %v1520_v40  ;;  %v1596_v35 = vmax.f32 %v1592_v12, 0.0  ;;  %v1636_v22 = vadd.f32 %v1404_v46, %v1328_v19  ;;  %v1620_v37 = vadd.f32 %v1588_v36, %v1580_v13  ;;  %v4049_v46 = vld [vmem:[#allocation16_spill] sm:$0xff] }
 0x172   :  { %v3216_v48 = vadd.f32 %v1685_v17, %v2971_v14  ;;  %v3219_v18 = vadd.f32 %v1685_v17, %v4045_v44  ;;  %v3222_v5 = vadd.f32 %v1685_v17, %v3082_v11  ;;  %v3225_v31 = vadd.f32 %v1685_v17, %v3103_v56 }
 0x173   :  { %v1682_v32 = vadd.f32 %v1674_v26, %v852_v53  ;;  %v1671_v0 = vadd.f32 %v856_v7, %v3159_v45  ;;  %v3228_v34 = vpop.f32.mrf.mxu1  ;;  %v858_v10 = vpop.f32.mrf.mxu0  ;;  %v1552_v19 = vadd.f32 %v1548_v63, %v1544_v58  ;;  %v3231_v14 = vadd.f32 %v1685_v17, %v4049_v46 }
 0x174   :  { %4044 = vst [vmem:[#allocation29_spill] sm:$0xff] %v3216_v48  ;;  %4046 = vst [vmem:[#allocation36_spill] sm:$0xff] %v3219_v18  ;;  %v1604_v3 = vmax.f32 %v1600_v15, 0.0  ;;  %v1612_v29 = vadd.f32 %v1608_v51, %v4050_v1  ;;  %v4051_v11 = vmax.f32 %v3112_v4, 0.0  ;;  %v4052_v54 = vmax.f32 %v3095_v27, 0.0  ;;  %v4056_v27 = vld [vmem:[#allocation56_spill] sm:$0xff] }
 0x175   :  { %4047 = vst [vmem:[#allocation38_spill] sm:$0xff] %v3222_v5  ;;  %4048 = vst [vmem:[#allocation39_spill] sm:$0xff] %v3225_v31  ;;  %v1686_v56 = vmul.f32 0.2, %v1682_v32  ;;  %v1675_v40 = vadd.f32 %v1671_v0, %v3156_v16  ;;  %v3239_v13 = vpop.f32.mrf.mxu1  ;;  %v860_v45 = vpop.f32.mrf.mxu0  ;;  %v1556_v53 = vadd.f32 %v1552_v19, %v1540_v50  ;;  %v1311_v58 = vmax.f32 %v3109_v33, 0.0 }
 0x176   :  { %v1315_v47 = vadd.f32 %v4052_v54, %v4051_v11  ;;  %4053 = vst [vmem:[#allocation54_spill] sm:$0xff] %v3239_v13  ;;  %v1672_v24 = vadd.f32 %v860_v45, %v3174_v55  ;;  %v1616_v36 = vmax.f32 %v1612_v29, 0.0  ;;  %v1624_v12 = vadd.f32 %v1604_v3, %v1596_v35 }
 0x177   :  { %v4054_v17 = vmax.f32 %v3098_v9, 0.0  ;;  %v4055_v4 = vmax.f32 %v3106_v8, 0.0  ;;  %v3248_v15 = vadd.f32 %v1686_v56, %v4056_v27  ;;  %v3251_v16 = vadd.f32 %v1686_v56, %v2987_v59  ;;  %v3256_v7 = vpop.f32.mrf.mxu1  ;;  %v862_v33 = vpop.f32.mrf.mxu0  ;;  %v4077_v27 = vld [vmem:[#allocation75_spill] sm:$0xff] }
 0x178   :  { %v3254_v51 = vadd.f32 %v1686_v56, %v3126_v60  ;;  %4060 = vst [vmem:[#allocation83_spill] sm:$0xff] %v3256_v7  ;;  %v1351_v55 = vmax.f32 %v3118_v62, 0.0  ;;  %v3260_v50 = vadd.f32 %v1686_v56, %v3141_v2  ;;  %v1683_v9 = vadd.f32 %v1675_v40, %v858_v10 }
 0x179   :  { %v1319_v26 = vadd.f32 %v4055_v4, %v4054_v17  ;;  %4057 = vst [vmem:[#allocation16_spill] sm:$0xff] %v3248_v15  ;;  %4058 = vst [vmem:[#allocation41_spill] sm:$0xff] %v3251_v16  ;;  %v1676_v8 = vadd.f32 %v1672_v24, %v3172_v23  ;;  %v1628_v63 = vadd.f32 %v1624_v12, %v1620_v37  ;;  %v3263_v35 = vpop.f32.mrf.mxu1  ;;  %v3265_v44 = vpop.f32.mrf.mxu0  ;;  %v4063_v23 = vld [vmem:[#allocation17_spill] sm:$0xff]  ;;  %v4073_v12 = vld [vmem:[#allocation18_spill] sm:$0xff] }
 0x17a   :  { %4059 = vst [vmem:[#allocation56_spill] sm:$0xff] %v3254_v51  ;;  %4061 = vst [vmem:[#allocation84_spill] sm:$0xff] %v3260_v50  ;;  %v1640_v59 = vadd.f32 %v1556_v53, %v1480_v52  ;;  %v1359_v60 = vadd.f32 %v3137_v49, %v3022_v38  ;;  %v1367_v0 = vadd.f32 %v3071_v43, %v2882_v6  ;;  %v1687_v62 = vmul.f32 0.2, %v1683_v9  ;;  %v4075_v4 = vld [vmem:[#allocation70_spill] sm:$0xff]  ;;  %v4079_v9 = vld [vmem:[#allocation15_spill] sm:$0xff] }
 0x17b   :  { %4062 = vst [vmem:[#allocation85_spill] sm:$0xff] %v3265_v44  ;;  %v1323_v32 = vadd.f32 %v1319_v26, %v1315_v47  ;;  %v1684_v19 = vadd.f32 %v1676_v8, %v862_v33  ;;  %v1632_v2 = vadd.f32 %v1628_v63, %v1616_v36  ;;  %v1375_v10 = vadd.f32 %v3071_v43, %v2890_v28  ;;  %v3276_v46 = vpop.f32.mrf.mxu1  ;;  %v3278_v3 = vpop.f32.mrf.mxu0  ;;  %v4072_v36 = vld [vmem:[#allocation14_spill] sm:$0xff]  ;;  %v4081_v63 = vld [vmem:[#allocation31_spill] sm:$0xff] }
 0x17c   :  { %v3274_v37 = vadd.f32 %v1686_v56, %v4063_v23  ;;  %4064 = vst [vmem:[#allocation17_spill] sm:$0xff] %v3278_v3  ;;  %v1644_v52 = vadd.f32 %v1640_v59, %v1636_v22  ;;  %v1363_v38 = vmax.f32 %v1359_v60, 0.0  ;;  %v3283_v49 = vadd.f32 %v1687_v62, %v2995_v21 }
 0x17d   :  { %v3280_v1 = vadd.f32 %v1323_v32, %v1311_v58  ;;  %v3286_v29 = vadd.f32 %v1687_v62, %v3018_v61  ;;  %v3289_v11 = vadd.f32 %v1687_v62, %v3151_v57  ;;  %v1371_v54 = vmax.f32 %v1367_v0, 0.0  ;;  %v3296_v40 = vpop.f32.mrf.mxu1  ;;  %v3298_v22 = vpop.f32.mrf.mxu0  ;;  %v4070_v58 = vld [vmem:[#allocation13_spill] sm:$0xff]  ;;  %v4071_v57 = vld [vmem:[#allocation78_spill] sm:$0xff] }
 0x17e   :  { %4065 = vst [vmem:[#allocation86_spill] sm:$0xff] %v3283_v49  ;;  %v3292_v47 = vadd.f32 %v1687_v62, %v3161_v39  ;;  %v3294_v56 = vmul.f32 0.2, %v1684_v19  ;;  %v3300_v45 = vadd.f32 %v1644_v52, %v1632_v2  ;;  %v1379_v21 = vmax.f32 %v1375_v10, 0.0  ;;  %v4098_v49 = vld [vmem:[#allocation76_spill] sm:$0xff] }
 0x17f   :  { %4066 = vst [vmem:[#allocation87_spill] sm:$0xff] %v3286_v29  ;;  %4067 = vst [vmem:[#allocation88_spill] sm:$0xff] %v3289_v11  ;;  %v1383_v61 = vadd.f32 %v3071_v43, %v2939_v25  ;;  %v1391_v53 = vadd.f32 %v1363_v38, %v1351_v55  ;;  %v1423_v24 = vadd.f32 %v4071_v57, %v4070_v58  ;;  %v3323_v55 = vpop.f32.mrf.mxu1  ;;  %v3325_v8 = vpop.f32.mrf.mxu0 }
 0x180   :  { %4068 = vst [vmem:[#allocation89_spill] sm:$0xff] %v3292_v47  ;;  %4069 = vst [vmem:[#allocation90_spill] sm:$0xff] %v3300_v45  ;;  %v1431_v39 = vadd.f32 %v4071_v57, %v4072_v36  ;;  %v3309_v17 = vadd.f32 %v1687_v62, %v4073_v12  ;;  %v3313_v26 = vadd.f32 %v3294_v56, %v4075_v4  ;;  %v4083_v12 = vld [vmem:[#allocation79_spill] sm:$0xff]  ;;  %v4085_v4 = vld [vmem:[#allocation32_spill] sm:$0xff] }
 0x181   :  { %v3317_v33 = vadd.f32 %v3294_v56, %v4077_v27  ;;  %v3321_v43 = vadd.f32 %v3294_v56, %v4079_v9  ;;  %v3329_v59 = vadd.f32 %v3294_v56, %v4081_v63  ;;  %v1387_v32 = vmax.f32 %v1383_v61, 0.0  ;;  %v3331_v62 = vpop.f32.mrf.mxu1  ;;  %v3333_v19 = vpop.f32.mrf.mxu0 }
 0x182   :  { %4074 = vst [vmem:[#allocation13_spill] sm:$0xff] %v3309_v17  ;;  %4076 = vst [vmem:[#allocation78_spill] sm:$0xff] %v3313_v26  ;;  %v1395_v60 = vadd.f32 %v1379_v21, %v1371_v54  ;;  %v1427_v0 = vmax.f32 %v1423_v24, 0.0  ;;  %v1435_v2 = vmax.f32 %v1431_v39, 0.0  ;;  %v1439_v10 = vadd.f32 %v4071_v57, %v2882_v6  ;;  %v4107_v26 = vld [vmem:[#allocation26_spill] sm:$0xff] }
 0x183   :  { %4078 = vst [vmem:[#allocation14_spill] sm:$0xff] %v3317_v33  ;;  %4080 = vst [vmem:[#allocation18_spill] sm:$0xff] %v3321_v43  ;;  %v1451_v23 = vadd.f32 %v4071_v57, %v2890_v28  ;;  %v1459_v52 = vadd.f32 %v4071_v57, %v2939_v25  ;;  %v1499_v61 = vadd.f32 %v4083_v12, %v4070_v58  ;;  %v3347_v24 = vpop.f32.mrf.mxu1  ;;  %v3349_v39 = vpop.f32.mrf.mxu0 }
 0x184   :  { %4082 = vst [vmem:[#allocation70_spill] sm:$0xff] %v3329_v59  ;;  %v1399_v38 = vadd.f32 %v1395_v60, %v1391_v53  ;;  %v1507_v54 = vadd.f32 %v4083_v12, %v4072_v36  ;;  %v1515_v21 = vadd.f32 %v4083_v12, %v2882_v6  ;;  %4084 = vst [vmem:[#allocation75_spill] sm:$0xff] %v3349_v39  ;;  %v4100_v59 = vld [vmem:[#allocation11_spill] sm:$0xff] }
 0x185   :  { %v1443_v27 = vadd.f32 %v1439_v10, %v4085_v4  ;;  %v1455_v9 = vmax.f32 %v1451_v23, 0.0  ;;  %v1463_v63 = vmax.f32 %v1459_v52, 0.0  ;;  %v1467_v45 = vadd.f32 %v1435_v2, %v1427_v0  ;;  %v3352_v5 = vpop.f32.mrf.mxu1  ;;  %v3354_v18 = vpop.f32.mrf.mxu0 }
 0x186   :  { %v1403_v57 = vadd.f32 %v1399_v38, %v1387_v32  ;;  %v1503_v53 = vmax.f32 %v1499_v61, 0.0  ;;  %v1511_v60 = vmax.f32 %v1507_v54, 0.0  ;;  %v1519_v31 = vmax.f32 %v1515_v21, 0.0  ;;  %4086 = vst [vmem:[#allocation15_spill] sm:$0xff] %v3354_v18  ;;  %v4088_v32 = vld [vmem:[#allocation80_spill] sm:$0xff] }
 0x187   :  { %v1447_v48 = vmax.f32 %v1443_v27, 0.0  ;;  %v1523_v50 = vadd.f32 %v4083_v12, %v2890_v28  ;;  %v1535_v51 = vadd.f32 %v4083_v12, %v2939_v25  ;;  %v4087_v10 = vmov 0.0   ;;  %v3368_v38 = vpop.f32.mrf.mxu1  ;;  %v3370_v61 = vpop.f32.mrf.mxu0  ;;  %v4090_v12 = vld [vmem:[#allocation33_spill] sm:$0xff] }
 0x188   :  { %2420 = vmatprep.mubr.msk.f32.mxu1 %vm2536_vm1, %v4087_v10  ;;  %v1543_v0 = vadd.f32 %v1511_v60, %v1503_v53  ;;  %v1575_v2 = vadd.f32 %v4088_v32, %v4070_v58  ;;  %v1583_v23 = vadd.f32 %v4088_v32, %v4072_v36  ;;  %v1591_v52 = vadd.f32 %v4088_v32, %v2882_v6 }
 0x189   :  { %4089 = vst [vmem:[#allocation31_spill] sm:$0xff] %v3370_v61  ;;  %v1471_v54 = vadd.f32 %v1455_v9, %v1447_v48  ;;  %v1527_v21 = vadd.f32 %v1523_v50, %v4090_v12  ;;  %v1539_v4 = vmax.f32 %v1535_v51, 0.0  ;;  %v1599_v27 = vadd.f32 %v4088_v32, %v2890_v28  ;;  %v773_v16 = vpop.f32.mrf.mxu1  ;;  %v3377_v15 = vpop.f32.mrf.mxu0  ;;  %v4091_v9 = vld [vmem:[#allocation53_spill] sm:$0xff]  ;;  %v4092_v51 = vld [vmem:[#allocation34_spill] sm:$0xff]  ;;  %v4108_v61 = vld [vmem:[#allocation68_spill] sm:$0xff] }
 0x18a   :  { %v1579_v53 = vmax.f32 %v1575_v2, 0.0  ;;  %v1587_v60 = vmax.f32 %v1583_v23, 0.0  ;;  %v1595_v58 = vmax.f32 %v1591_v52, 0.0  ;;  %v1607_v36 = vadd.f32 %v4088_v32, %v2939_v25  ;;  %v4093_v2 = vld [vmem:[#allocation81_spill] sm:$0xff] }
 0x18b   :  { %v1475_v6 = vadd.f32 %v1471_v54, %v1467_v45  ;;  %v1531_v47 = vmax.f32 %v1527_v21, 0.0  ;;  %v1603_v11 = vmax.f32 %v1599_v27, 0.0  ;;  %v1635_v48 = vadd.f32 %v1403_v57, %v3280_v1  ;;  %v3385_v52 = vpop.f32.mrf.mxu1  ;;  %v3387_v10 = vpop.f32.mrf.mxu0  ;;  %v4094_v45 = vld [vmem:[#allocation77_spill] sm:$0xff]  ;;  %v4095_v27 = vld [vmem:[#allocation82_spill] sm:$0xff] }
 0x18c   :  { %v3381_v50 = vadd.f32 %v773_v16, %v4091_v9  ;;  %v1611_v12 = vadd.f32 %v1607_v36, %v4092_v51  ;;  %v1619_v28 = vadd.f32 %v1587_v60, %v1579_v53  ;;  %v1262_v23 = vmax.f32 %v4093_v2, 0.0  ;;  %v4096_v57 = vld [vmem:[#allocation42_spill] sm:$0xff]  ;;  %v4097_v16 = vld [vmem:[#allocation67_spill] sm:$0xff] }
 0x18d   :  { %v1479_v25 = vadd.f32 %v1475_v6, %v1463_v63  ;;  %v1547_v32 = vadd.f32 %v1531_v47, %v1519_v31  ;;  %v1623_v29 = vadd.f32 %v1603_v11, %v1595_v58  ;;  %v1286_v54 = vmax.f32 %v4094_v45, 0.0  ;;  %v777_v60 = vpop.f32.mrf.mxu1  ;;  %v3395_v51 = vpop.f32.mrf.mxu0  ;;  %v4101_v63 = vld [vmem:[#allocation73_spill] sm:$0xff]  ;;  %v4102_v11 = vld [vmem:[#allocation12_spill] sm:$0xff]  ;;  %v4103_v58 = vld [vmem:[#allocation19_spill] sm:$0xff] }
 0x18e   :  { %v1615_v21 = vmax.f32 %v1611_v12, 0.0  ;;  %v1298_v1 = vmax.f32 %v4095_v27, 0.0  ;;  %v1306_v9 = vadd.f32 %v4097_v16, %v4096_v57  ;;  %v4099_v36 = vmax.f32 %v4098_v49, 0.0  ;;  %v4105_v27 = vld [vmem:[#allocation22_spill] sm:$0xff] }
 0x18f   :  { %v1551_v2 = vadd.f32 %v1547_v32, %v1543_v0  ;;  %v1627_v39 = vadd.f32 %v1623_v29, %v1619_v28  ;;  %v1346_v31 = vadd.f32 %v4101_v63, %v4100_v59  ;;  %v1354_v47 = vadd.f32 %v4101_v63, %v4102_v11  ;;  %v3409_v16 = vpop.f32.mrf.mxu0  ;;  %v4106_v32 = vld [vmem:[#allocation64_spill] sm:$0xff] }
 0x190   :  { %v1314_v53 = vadd.f32 %v4099_v36, %v1262_v23  ;;  %v3403_v6 = vadd.f32 %v3294_v56, %v4103_v58  ;;  %v1310_v12 = vmax.f32 %v1306_v9, 0.0  ;;  %v1318_v45 = vadd.f32 %v1298_v1, %v1286_v54  ;;  %v3407_v23 = vpop.f32.mrf.mxu1 }
 0x191   :  { %v1366_v49 = vadd.f32 %v4101_v63, %v4105_v27  ;;  %v1555_v29 = vadd.f32 %v1551_v2, %v1539_v4  ;;  %v1631_v0 = vadd.f32 %v1627_v39, %v1615_v21  ;;  %v1350_v28 = vmax.f32 %v1346_v31, 0.0  ;;  %v3416_v9 = vpop.f32.mrf.mxu0  ;;  %v4109_v21 = vld [vmem:[#allocation57_spill] sm:$0xff] }
 0x192   :  { %4104 = vst [vmem:[#allocation79_spill] sm:$0xff] %v3403_v6  ;;  %v1358_v36 = vadd.f32 %v1354_v47, %v4106_v32  ;;  %v1322_v43 = vadd.f32 %v1318_v45, %v1314_v53  ;;  %v1374_v56 = vadd.f32 %v4101_v63, %v4107_v26  ;;  %v1382_v54 = vadd.f32 %v4101_v63, %v4096_v57  ;;  %v783_v1 = vpop.f32.mrf.mxu1  ;;  %v4110_v2 = vld [vmem:[#allocation65_spill] sm:$0xff] }
 0x193   :  { %v1370_v33 = vmax.f32 %v1366_v49, 0.0  ;;  %v1639_v58 = vadd.f32 %v1555_v29, %v1479_v25  ;;  %v1422_v4 = vadd.f32 %v4108_v61, %v4100_v59  ;;  %v1430_v39 = vadd.f32 %v4108_v61, %v4102_v11  ;;  %v3428_v63 = vpop.f32.mrf.mxu0 }
 0x194   :  { %v1362_v6 = vmax.f32 %v1358_v36, 0.0  ;;  %v3423_v53 = vadd.f32 %v777_v60, %v4109_v21  ;;  %v3426_v31 = vadd.f32 %v783_v1, %v4110_v2  ;;  %v1326_v47 = vadd.f32 %v1322_v43, %v1310_v12 }
 0x195   :  { %v1378_v45 = vmax.f32 %v1374_v56, 0.0  ;;  %v1643_v49 = vadd.f32 %v1639_v58, %v1635_v48  ;;  %v1426_v25 = vmax.f32 %v1422_v4, 0.0  ;;  %v1434_v29 = vmax.f32 %v1430_v39, 0.0  ;;  %v3436_v1 = vpop.f32.mrf.mxu0  ;;  %v4113_v48 = vld [vmem:[#allocation69_spill] sm:$0xff]  ;;  %v4114_v56 = vld [vmem:[#allocation27_spill] sm:$0xff] }
 0x196   :  { %v1390_v32 = vadd.f32 %v1362_v6, %v1350_v28  ;;  %v1438_v18 = vadd.f32 %v4108_v61, %v4105_v27  ;;  %v1450_v7 = vadd.f32 %v4108_v61, %v4107_v26  ;;  %v1458_v60 = vadd.f32 %v4108_v61, %v4096_v57  ;;  %4111 = vst [vmem:[#allocation32_spill] sm:$0xff] %v3436_v1  ;;  %v4119_v1 = vld [vmem:[#allocation30_spill] sm:$0xff] }
 0x197   :  { %v1394_v36 = vadd.f32 %v1378_v45, %v1370_v33  ;;  %v3438_v43 = vadd.f32 %v1643_v49, %v1631_v0  ;;  %v1386_v12 = vmax.f32 %v1382_v54, 0.0  ;;  %v1498_v6 = vadd.f32 %v4113_v48, %v4100_v59  ;;  %v3445_v21 = vpop.f32.mrf.mxu0 }
 0x198   :  { %v1506_v33 = vadd.f32 %v4113_v48, %v4102_v11  ;;  %v1442_v58 = vadd.f32 %v1438_v18, %v4114_v56  ;;  %v1454_v4 = vmax.f32 %v1450_v7, 0.0  ;;  %v1466_v39 = vadd.f32 %v1434_v29, %v1426_v25  ;;  %4115 = vst [vmem:[#allocation33_spill] sm:$0xff] %v3445_v21  ;;  %v4116_v25 = vld [vmem:[#allocation72_spill] sm:$0xff] }
 0x199   :  { %4112 = vst [vmem:[#allocation80_spill] sm:$0xff] %v3438_v43  ;;  %v1398_v28 = vadd.f32 %v1394_v36, %v1390_v32  ;;  %v1462_v2 = vmax.f32 %v1458_v60, 0.0  ;;  %v1502_v61 = vmax.f32 %v1498_v6, 0.0  ;;  %v1514_v0 = vadd.f32 %v4113_v48, %v4105_v27  ;;  %v906_v36 = vpop.f32.mrf.mxu0  ;;  %v785_v6 = vpop.f32.mrf.mxu1 }
 0x19a   :  { %v1510_v45 = vmax.f32 %v1506_v33, 0.0  ;;  %v1446_v49 = vmax.f32 %v1442_v58, 0.0  ;;  %v1522_v43 = vadd.f32 %v4113_v48, %v4107_v26  ;;  %v1534_v32 = vadd.f32 %v4113_v48, %v4096_v57 }
 0x19b   :  { %v1402_v54 = vadd.f32 %v1398_v28, %v1386_v12  ;;  %v1518_v18 = vmax.f32 %v1514_v0, 0.0  ;;  %v1574_v29 = vadd.f32 %v4116_v25, %v4100_v59  ;;  %v1582_v60 = vadd.f32 %v4116_v25, %v4102_v11  ;;  %v4117_v28 = vld [vmem:[#allocation28_spill] sm:$0xff]  ;;  %v908_v13 = vpop.f32.mrf.mxu0 }
 0x19c   :  { %v1542_v7 = vadd.f32 %v1510_v45, %v1502_v61  ;;  %v1709_v33 = vadd.f32 %v906_v36, %v3385_v52  ;;  %v1470_v12 = vadd.f32 %v1454_v4, %v1446_v49  ;;  %v1526_v56 = vadd.f32 %v1522_v43, %v4117_v28  ;;  %v787_v36 = vpop.f32.mrf.mxu1 }
 0x19d   :  { %v1538_v58 = vmax.f32 %v1534_v32, 0.0  ;;  %v1578_v17 = vmax.f32 %v1574_v29, 0.0  ;;  %v1586_v21 = vmax.f32 %v1582_v60, 0.0  ;;  %v1590_v48 = vadd.f32 %v4116_v25, %v4105_v27  ;;  %v910_v4 = vpop.f32.mrf.mxu0 }
 0x19e   :  { %v1598_v61 = vadd.f32 %v4116_v25, %v4107_v26  ;;  %v1713_v59 = vadd.f32 %v1709_v33, %v3381_v50  ;;  %v1474_v45 = vadd.f32 %v1470_v12, %v1466_v39  ;;  %v1530_v11 = vmax.f32 %v1526_v56, 0.0  ;;  %v4120_v33 = vld [vmem:[#allocation9_spill] sm:$0xff]  ;;  %v4121_v12 = vld [vmem:[#allocation66_spill] sm:$0xff] }
 0x19f   :  { %v1606_v52 = vadd.f32 %v4116_v25, %v4096_v57  ;;  %v1594_v0 = vmax.f32 %v1590_v48, 0.0  ;;  %v1618_v49 = vadd.f32 %v1586_v21, %v1578_v17  ;;  %v3466_v32 = vadd.f32 %v1402_v54, %v1326_v47  ;;  %v912_v26 = vpop.f32.mrf.mxu0  ;;  %v4122_v57 = vld [vmem:[#allocation10_spill] sm:$0xff] }
 0x1a0   :  { %v1602_v43 = vmax.f32 %v1598_v61, 0.0  ;;  %v1721_v29 = vadd.f32 %v1713_v59, %v908_v13  ;;  %v1710_v27 = vadd.f32 %v910_v4, %v3407_v23  ;;  %v1478_v60 = vadd.f32 %v1474_v45, %v1462_v2  ;;  %v4124_v13 = vld [vmem:[#allocation20_spill] sm:$0xff]  ;;  %v4126_v2 = vld [vmem:[#allocation74_spill] sm:$0xff]  ;;  %v4127_v61 = vld [vmem:[#allocation61_spill] sm:$0xff] }
 0x1a1   :  { %4118 = vst [vmem:[#allocation53_spill] sm:$0xff] %v3466_v32  ;;  %v1546_v28 = vadd.f32 %v1530_v11, %v1518_v18  ;;  %v1610_v50 = vadd.f32 %v1606_v52, %v4119_v1  ;;  %v1253_v56 = vadd.f32 %v4121_v12, %v4120_v33  ;;  %v3474_v25 = vadd.f32 %v4121_v12, %v4122_v57  ;;  %v916_v18 = vpop.f32.mrf.mxu0  ;;  %v4129_v45 = vld [vmem:[#allocation52_spill] sm:$0xff]  ;;  %v4159_v32 = vld [vmem:[#allocation31_spill] sm:$0xff] }
 0x1a2   :  { %v1622_v39 = vadd.f32 %v1602_v43, %v1594_v0  ;;  %v1725_v17 = vmul.f32 0.2, %v1721_v29  ;;  %v1714_v47 = vadd.f32 %v1710_v27, %v3423_v53  ;;  %v3479_v23 = vadd.f32 %v4121_v12, %v4124_v13  ;;  %v4131_v27 = vld [vmem:[#allocation47_spill] sm:$0xff]  ;;  %v4148_v29 = vld [vmem:[#allocation49_spill] sm:$0xff] }
 0x1a3   :  { %4123 = vst [vmem:[#allocation34_spill] sm:$0xff] %v3474_v25  ;;  %v1550_v21 = vadd.f32 %v1546_v28, %v1542_v7  ;;  %v1700_v54 = vadd.f32 %v787_v36, %v4126_v2  ;;  %v1614_v1 = vmax.f32 %v1610_v50, 0.0  ;;  %v3483_v59 = vadd.f32 %v1253_v56, %v4127_v61  ;;  %v918_v43 = vpop.f32.mrf.mxu0  ;;  %v4137_v2 = vld [vmem:[#allocation40_spill] sm:$0xff] }
 0x1a4   :  { %4125 = vst [vmem:[#allocation81_spill] sm:$0xff] %v3479_v23  ;;  %v1626_v48 = vadd.f32 %v1622_v39, %v1618_v49  ;;  %v1729_v11 = vadd.f32 %v1725_v17, %v4129_v45  ;;  %v1722_v52 = vadd.f32 %v1714_v47, %v912_v26  ;;  %v1711_v4 = vadd.f32 %v916_v18, %v785_v6  ;;  %v789_v26 = vpop.f32.mrf.mxu1  ;;  %v4138_v18 = vld [vmem:[#allocation35_spill] sm:$0xff]  ;;  %v4155_v23 = vld [vmem:[#allocation46_spill] sm:$0xff] }
 0x1a5   :  { %4128 = vst [vmem:[#allocation77_spill] sm:$0xff] %v3483_v59  ;;  %v1554_v0 = vadd.f32 %v1550_v21, %v1538_v58  ;;  %v920_v17 = vpop.f32.mrf.mxu0  ;;  %v4156_v59 = vld [vmem:[#allocation54_spill] sm:$0xff] }
 0x1a6   :  { %v3486_v53 = vadd.f32 %v1626_v48, %v1614_v1  ;;  %v1737_v28 = vadd.f32 %v1729_v11, %v4131_v27  ;;  %v3493_v49 = vadd.f32 %v1729_v11, %v3263_v35  ;;  %v3496_v50 = vadd.f32 %v1729_v11, %v3276_v46 }
 0x1a7   :  { %v3499_v6 = vadd.f32 %v1729_v11, %v3377_v15  ;;  %v3502_v58 = vadd.f32 %v1729_v11, %v3387_v10  ;;  %v1726_v39 = vmul.f32 0.2, %v1722_v52  ;;  %v1715_v56 = vadd.f32 %v1711_v4, %v3426_v31  ;;  %v4141_v15 = vld [vmem:[#allocation50_spill] sm:$0xff]  ;;  %v4145_v4 = vld [vmem:[#allocation48_spill] sm:$0xff]  ;;  %v4154_v52 = vld [vmem:[#allocation13_spill] sm:$0xff] }
 0x1a8   :  { %4130 = vst [vmem:[#allocation82_spill] sm:$0xff] %v3486_v53  ;;  %4132 = vst [vmem:[#allocation42_spill] sm:$0xff] %v3493_v49  ;;  %v3505_v47 = vadd.f32 %v1554_v0, %v1478_v60  ;;  %v1712_v21 = vadd.f32 %v920_v17, %v789_v26  ;;  %v1753_v35 = vadd.f32 %v1737_v28, %v4137_v2  ;;  %v4146_v17 = vld [vmem:[#allocation43_spill] sm:$0xff]  ;;  %v4152_v11 = vld [vmem:[#allocation32_spill] sm:$0xff] }
 0x1a9   :  { %4133 = vst [vmem:[#allocation67_spill] sm:$0xff] %v3496_v50  ;;  %4134 = vst [vmem:[#allocation76_spill] sm:$0xff] %v3499_v6  ;;  %v3509_v1 = vadd.f32 %v1737_v28, %v4138_v18  ;;  %v3512_v46 = vadd.f32 %v1737_v28, %v3187_v42  ;;  %v1730_v48 = vadd.f32 %v1726_v39, %v4141_v15  ;;  %v4157_v53 = vld [vmem:[#allocation83_spill] sm:$0xff] }
 0x1aa   :  { %4135 = vst [vmem:[#allocation11_spill] sm:$0xff] %v3502_v58  ;;  %4136 = vst [vmem:[#allocation73_spill] sm:$0xff] %v3505_v47  ;;  %v1723_v10 = vadd.f32 %v1715_v56, %v918_v43  ;;  %v3516_v61 = vadd.f32 %v1737_v28, %v3265_v44  ;;  %v3519_v31 = vadd.f32 %v1737_v28, %v3278_v3  ;;  %v922_v28 = vpop.f32.mrf.mxu0  ;;  %v4158_v47 = vld [vmem:[#allocation15_spill] sm:$0xff]  ;;  %v4161_v3 = vld [vmem:[#allocation78_spill] sm:$0xff] }
 0x1ab   :  { %4139 = vst [vmem:[#allocation12_spill] sm:$0xff] %v3509_v1  ;;  %4140 = vst [vmem:[#allocation19_spill] sm:$0xff] %v3512_v46  ;;  %v1716_v60 = vadd.f32 %v1712_v21, %v1700_v54  ;;  %v3522_v45 = vadd.f32 %v1753_v35, %v3231_v14  ;;  %v1738_v0 = vadd.f32 %v1730_v48, %v4145_v4 }
 0x1ac   :  { %4142 = vst [vmem:[#allocation22_spill] sm:$0xff] %v3516_v61  ;;  %4143 = vst [vmem:[#allocation64_spill] sm:$0xff] %v3519_v31  ;;  %v3528_v27 = vadd.f32 %v1730_v48, %v3296_v40  ;;  %v3531_v43 = vadd.f32 %v1730_v48, %v3323_v55  ;;  %v3534_v26 = vadd.f32 %v1730_v48, %v3395_v51  ;;  %v1727_v14 = vmul.f32 0.2, %v1723_v10  ;;  %v4147_v51 = vld [vmem:[#allocation63_spill] sm:$0xff] }
 0x1ad   :  { %4144 = vst [vmem:[#allocation26_spill] sm:$0xff] %v3522_v45  ;;  %v3537_v54 = vadd.f32 %v1730_v48, %v3409_v16  ;;  %v1724_v39 = vadd.f32 %v1716_v60, %v922_v28  ;;  %v1754_v21 = vadd.f32 %v1738_v0, %v4146_v17  ;;  %v3542_v35 = vadd.f32 %v1738_v0, %v3198_v20  ;;  %v4153_v28 = vld [vmem:[#allocation33_spill] sm:$0xff] }
 0x1ae   :  { %v3545_v40 = vadd.f32 %v1738_v0, %v3204_v41  ;;  %v3548_v55 = vadd.f32 %v1738_v0, %v3298_v22  ;;  %v1731_v15 = vadd.f32 %v1727_v14, %v4147_v51  ;;  %v3552_v16 = vadd.f32 %v1738_v0, %v3325_v8 }
 0x1af   :  { %v1728_v4 = vmul.f32 0.2, %v1724_v39  ;;  %v3556_v48 = vadd.f32 %v3528_v27, %v4146_v17  ;;  %v3559_v10 = vadd.f32 %v1754_v21, %v3274_v37  ;;  %v4149_v21 = vld [vmem:[#allocation55_spill] sm:$0xff] }
 0x1b0   :  { %v3565_v7 = vadd.f32 %v1731_v15, %v4148_v29  ;;  %v3568_v14 = vadd.f32 %v1731_v15, %v3331_v62  ;;  %v3571_v0 = vadd.f32 %v1731_v15, %v3347_v24  ;;  %v3574_v39 = vadd.f32 %v1731_v15, %v3416_v9  ;;  %v4150_v29 = vld [vmem:[#allocation44_spill] sm:$0xff] }
 0x1b1   :  { %v3577_v37 = vadd.f32 %v1731_v15, %v3428_v63  ;;  %v1732_v51 = vadd.f32 %v1728_v4, %v4149_v21  ;;  %v4151_v63 = vld [vmem:[#allocation51_spill] sm:$0xff] }
 0x1b2   :  { %v1755_v56 = vadd.f32 %v3565_v7, %v4150_v29  ;;  %v3586_v62 = vadd.f32 %v3565_v7, %v3213_v30  ;;  %v3590_v24 = vadd.f32 %v3565_v7, %v3228_v34  ;;  %v3594_v9 = vadd.f32 %v3565_v7, %v3333_v19 }
 0x1b3   :  { %v1740_v15 = vadd.f32 %v1732_v51, %v4151_v63  ;;  %v1836_v4 = vadd.f32 %v1732_v51, %v3352_v5  ;;  %v1912_v21 = vadd.f32 %v1732_v51, %v3368_v38  ;;  %v1988_v36 = vadd.f32 %v1732_v51, %v4152_v11 }
 0x1b4   :  { %v3601_v60 = vadd.f32 %v1732_v51, %v4153_v28  ;;  %v3604_v13 = vadd.f32 %v1755_v56, %v4154_v52  ;;  %v4160_v56 = vld [vmem:[#allocation79_spill] sm:$0xff] }
 0x1b5   :  { %v1756_v25 = vadd.f32 %v1740_v15, %v4155_v23  ;;  %v1772_v63 = vadd.f32 %v1740_v15, %v4156_v59  ;;  %v1784_v5 = vadd.f32 %v1740_v15, %v4157_v53  ;;  %v1796_v38 = vadd.f32 %v1740_v15, %v4158_v47 }
 0x1b6   :  { %v1808_v11 = vadd.f32 %v1740_v15, %v4159_v32  ;;  %v1848_v28 = vadd.f32 %v1836_v4, %v4155_v23  ;;  %v1856_v51 = vadd.f32 %v1836_v4, %v4156_v59  ;;  %v1868_v52 = vadd.f32 %v1836_v4, %v4157_v53 }
 0x1b7   :  { %v1760_v57 = vadd.f32 %v1756_v25, %v4160_v56  ;;  %v1776_v58 = vmax.f32 %v1772_v63, 0.0  ;;  %v1788_v33 = vmax.f32 %v1784_v5, 0.0  ;;  %v1800_v6 = vmax.f32 %v1796_v38, 0.0 }
 0x1b8   :  { %v1812_v12 = vmax.f32 %v1808_v11, 0.0  ;;  %v1852_v50 = vmax.f32 %v1848_v28, 0.0  ;;  %v1860_v44 = vadd.f32 %v1856_v51, %v4161_v3  ;;  %v1872_v42 = vmax.f32 %v1868_v52, 0.0 }
 0x1b9   :  { %v1764_v18 = vmax.f32 %v1760_v57, 0.0  ;;  %v1820_v49 = vadd.f32 %v1800_v6, %v1788_v33  ;;  %v1876_v15 = vadd.f32 %v1836_v4, %v4158_v47  ;;  %v1884_v2 = vadd.f32 %v1836_v4, %v4159_v32  ;;  %v4162_v33 = vld [vmem:[#allocation14_spill] sm:$0xff] }
 0x1ba   :  { %v1864_v46 = vmax.f32 %v1860_v44, 0.0  ;;  %v1924_v1 = vadd.f32 %v1912_v21, %v4155_v23  ;;  %v1932_v45 = vadd.f32 %v1912_v21, %v4156_v59  ;;  %v1940_v25 = vadd.f32 %v1912_v21, %v4157_v53 }
 0x1bb   :  { %v1816_v63 = vadd.f32 %v1776_v58, %v1764_v18  ;;  %v1880_v5 = vmax.f32 %v1876_v15, 0.0  ;;  %v1888_v38 = vmax.f32 %v1884_v2, 0.0  ;;  %v1952_v11 = vadd.f32 %v1912_v21, %v4158_v47 }
 0x1bc   :  { %v1892_v3 = vadd.f32 %v1864_v46, %v1852_v50  ;;  %v1928_v28 = vmax.f32 %v1924_v1, 0.0  ;;  %v1936_v57 = vmax.f32 %v1932_v45, 0.0  ;;  %v1944_v6 = vadd.f32 %v1940_v25, %v4162_v33 }
 0x1bd   :  { %v1824_v51 = vadd.f32 %v1820_v49, %v1816_v63  ;;  %v1896_v52 = vadd.f32 %v1880_v5, %v1872_v42  ;;  %v1956_v4 = vmax.f32 %v1952_v11, 0.0  ;;  %v1960_v44 = vadd.f32 %v1912_v21, %v4159_v32  ;;  %v4163_v11 = vld [vmem:[#allocation18_spill] sm:$0xff] }
 0x1be   :  { %v1948_v56 = vmax.f32 %v1944_v6, 0.0  ;;  %v1968_v31 = vadd.f32 %v1936_v57, %v1928_v28  ;;  %v2000_v61 = vadd.f32 %v1988_v36, %v4155_v23  ;;  %v2008_v58 = vadd.f32 %v1988_v36, %v4156_v59 }
 0x1bf   :  { %v1828_v18 = vadd.f32 %v1824_v51, %v1812_v12  ;;  %v1900_v2 = vadd.f32 %v1896_v52, %v1892_v3  ;;  %v1964_v15 = vmax.f32 %v1960_v44, 0.0  ;;  %v2016_v50 = vadd.f32 %v1988_v36, %v4157_v53 }
 0x1c0   :  { %v1972_v1 = vadd.f32 %v1956_v4, %v1948_v56  ;;  %v2004_v46 = vmax.f32 %v2000_v61, 0.0  ;;  %v2012_v45 = vmax.f32 %v2008_v58, 0.0  ;;  %v2024_v49 = vadd.f32 %v1988_v36, %v4158_v47  ;;  %v4164_v56 = vld [vmem:[#allocation70_spill] sm:$0xff] }
 0x1c1   :  { %v1904_v42 = vadd.f32 %v1900_v2, %v1888_v38  ;;  %v2020_v25 = vmax.f32 %v2016_v50, 0.0  ;;  %v2036_v21 = vadd.f32 %v1988_v36, %v4159_v32  ;;  %v2076_v63 = vadd.f32 %v3601_v60, %v4155_v23 }
 0x1c2   :  { %v1976_v5 = vadd.f32 %v1972_v1, %v1968_v31  ;;  %v2028_v28 = vadd.f32 %v2024_v49, %v4163_v11  ;;  %v2044_v12 = vadd.f32 %v2012_v45, %v2004_v46  ;;  %v2084_v3 = vadd.f32 %v3601_v60, %v4156_v59  ;;  %v4165_v1 = vld [vmem:[#allocation75_spill] sm:$0xff] }
 0x1c3   :  { %v2040_v57 = vmax.f32 %v2036_v21, 0.0  ;;  %v2080_v33 = vmax.f32 %v2076_v63, 0.0  ;;  %v2092_v61 = vadd.f32 %v3601_v60, %v4157_v53  ;;  %v2100_v38 = vadd.f32 %v3601_v60, %v4158_v47  ;;  %v4168_v63 = vld [vmem:[#allocation86_spill] sm:$0xff] }
 0x1c4   :  { %v1980_v6 = vadd.f32 %v1976_v5, %v1964_v15  ;;  %v2032_v36 = vmax.f32 %v2028_v28, 0.0  ;;  %v2088_v51 = vmax.f32 %v2084_v3, 0.0  ;;  %v2108_v23 = vadd.f32 %v3601_v60, %v4159_v32 }
 0x1c5   :  { %v2096_v31 = vmax.f32 %v2092_v61, 0.0  ;;  %v2104_v52 = vmax.f32 %v2100_v38, 0.0  ;;  %v2136_v4 = vadd.f32 %v1904_v42, %v1828_v18  ;;  %v1763_v44 = vmax.f32 %v3604_v13, 0.0 }
 0x1c6   :  { %v2048_v59 = vadd.f32 %v2032_v36, %v2020_v25  ;;  %v2112_v58 = vadd.f32 %v2108_v23, %v4164_v56  ;;  %v2120_v2 = vadd.f32 %v2088_v51, %v2080_v33  ;;  %v1799_v53 = vmax.f32 %v3594_v9, 0.0 }
 0x1c7   :  { %v2124_v50 = vadd.f32 %v2104_v52, %v2096_v31  ;;  %v1807_v47 = vadd.f32 %v3565_v7, %v4165_v1  ;;  %v4166_v15 = vmax.f32 %v3586_v62, 0.0  ;;  %v1847_v32 = vadd.f32 %v3568_v14, %v4150_v29 }
 0x1c8   :  { %v2052_v60 = vadd.f32 %v2048_v59, %v2044_v12  ;;  %v2116_v18 = vmax.f32 %v2112_v58, 0.0  ;;  %v4167_v13 = vmax.f32 %v3590_v24, 0.0  ;;  %v1855_v49 = vadd.f32 %v3568_v14, %v3213_v30  ;;  %v4169_v58 = vld [vmem:[#allocation87_spill] sm:$0xff] }
 0x1c9   :  { %v1815_v46 = vadd.f32 %v4166_v15, %v1763_v44  ;;  %v2128_v42 = vadd.f32 %v2124_v50, %v2120_v2  ;;  %v1811_v9 = vmax.f32 %v1807_v47, 0.0  ;;  %v1851_v25 = vmax.f32 %v1847_v32, 0.0 }
 0x1ca   :  { %v1819_v45 = vadd.f32 %v1799_v53, %v4167_v13  ;;  %v1867_v7 = vadd.f32 %v3568_v14, %v3228_v34  ;;  %v2056_v21 = vadd.f32 %v2052_v60, %v2040_v57  ;;  %v1859_v5 = vadd.f32 %v1855_v49, %v4168_v63  ;;  %v4171_v63 = vld [vmem:[#allocation88_spill] sm:$0xff] }
 0x1cb   :  { %v1875_v11 = vadd.f32 %v3568_v14, %v3333_v19  ;;  %v2132_v28 = vadd.f32 %v2128_v42, %v2116_v18  ;;  %v1883_v24 = vadd.f32 %v3568_v14, %v4165_v1  ;;  %v1923_v3 = vadd.f32 %v3571_v0, %v4150_v29 }
 0x1cc   :  { %v1823_v62 = vadd.f32 %v1819_v45, %v1815_v46  ;;  %v1871_v12 = vmax.f32 %v1867_v7, 0.0  ;;  %v2140_v33 = vadd.f32 %v2056_v21, %v1980_v6  ;;  %v1863_v38 = vmax.f32 %v1859_v5, 0.0 }
 0x1cd   :  { %v1879_v36 = vmax.f32 %v1875_v11, 0.0  ;;  %v1887_v51 = vmax.f32 %v1883_v24, 0.0  ;;  %v1927_v57 = vmax.f32 %v1923_v3, 0.0  ;;  %v1931_v23 = vadd.f32 %v3571_v0, %v3213_v30 }
 0x1ce   :  { %v1827_v61 = vadd.f32 %v1823_v62, %v1811_v9  ;;  %v1939_v31 = vadd.f32 %v3571_v0, %v3228_v34  ;;  %v2144_v52 = vadd.f32 %v2140_v33, %v2136_v4  ;;  %v1891_v44 = vadd.f32 %v1863_v38, %v1851_v25 }
 0x1cf   :  { %v1895_v59 = vadd.f32 %v1879_v36, %v1871_v12  ;;  %v1951_v14 = vadd.f32 %v3571_v0, %v3333_v19  ;;  %v1935_v56 = vmax.f32 %v1931_v23, 0.0  ;;  %v1959_v2 = vadd.f32 %v3571_v0, %v4165_v1 }
 0x1d0   :  { %v1943_v6 = vadd.f32 %v1939_v31, %v4169_v58  ;;  %v1999_v53 = vadd.f32 %v3574_v39, %v4150_v29  ;;  %v2148_v50 = vadd.f32 %v2144_v52, %v2132_v28  ;;  %v2007_v4 = vadd.f32 %v3574_v39, %v3213_v30 }
 0x1d1   :  { %v1899_v47 = vadd.f32 %v1895_v59, %v1891_v44  ;;  %v1955_v15 = vmax.f32 %v1951_v14, 0.0  ;;  %v1963_v32 = vmax.f32 %v1959_v2, 0.0  ;;  %v1967_v60 = vadd.f32 %v1935_v56, %v1927_v57  ;;  %v4174_v59 = vld [vmem:[#allocation89_spill] sm:$0xff] }
 0x1d2   :  { %v1947_v46 = vmax.f32 %v1943_v6, 0.0  ;;  %v2003_v18 = vmax.f32 %v1999_v53, 0.0  ;;  %2413 = vmatpush3.msra.mxu1 %v2148_v50  ;;  %v2011_v45 = vmax.f32 %v2007_v4, 0.0  ;;  %v2015_v49 = vadd.f32 %v3574_v39, %v3228_v34  ;;  %v4177_v50 = vld [vmem:[#allocation16_spill] sm:$0xff] }
 0x1d3   :  { %v1903_v13 = vadd.f32 %v1899_v47, %v1887_v51  ;;  %v2023_v0 = vadd.f32 %v3574_v39, %v3333_v19  ;;  %v4170_v42 = vmov 0.0   ;;  %v2035_v25 = vadd.f32 %v3574_v39, %v4165_v1 }
 0x1d4   :  { %2414 = vmatprep.subr.mxu1 %v4170_v42  ;;  %v1971_v9 = vadd.f32 %v1955_v15, %v1947_v46  ;;  %v2075_v7 = vadd.f32 %v3577_v37, %v4150_v29  ;;  %v2083_v21 = vadd.f32 %v3577_v37, %v3213_v30  ;;  %v2019_v62 = vmax.f32 %v2015_v49, 0.0 }
 0x1d5   :  { %v2027_v5 = vadd.f32 %v2023_v0, %v4171_v63  ;;  %v2043_v11 = vadd.f32 %v2011_v45, %v2003_v18  ;;  %v2091_v28 = vadd.f32 %v3577_v37, %v3228_v34  ;;  %v2039_v24 = vmax.f32 %v2035_v25, 0.0 }
 0x1d6   :  { %v1975_v12 = vadd.f32 %v1971_v9, %v1967_v60  ;;  %v2079_v3 = vmax.f32 %v2075_v7, 0.0  ;;  %v2087_v33 = vmax.f32 %v2083_v21, 0.0  ;;  %v2099_v39 = vadd.f32 %v3577_v37, %v3333_v19 }
 0x1d7   :  { %v2031_v38 = vmax.f32 %v2027_v5, 0.0  ;;  %v2095_v36 = vmax.f32 %v2091_v28, 0.0  ;;  %v2107_v29 = vadd.f32 %v3577_v37, %v4165_v1  ;;  %v2135_v57 = vadd.f32 %v1903_v13, %v1827_v61  ;;  %v4179_v5 = vld [vmem:[#allocation41_spill] sm:$0xff] }
 0x1d8   :  { %v1979_v30 = vadd.f32 %v1975_v12, %v1963_v32  ;;  %v2119_v51 = vadd.f32 %v2087_v33, %v2079_v3  ;;  %v4172_v23 = vmax.f32 %v3559_v10, 0.0  ;;  %v4173_v31 = vmax.f32 %v3542_v35, 0.0 }
 0x1d9   :  { %v2047_v52 = vadd.f32 %v2031_v38, %v2019_v62  ;;  %v2103_v44 = vmax.f32 %v2099_v39, 0.0  ;;  %v2111_v14 = vadd.f32 %v2107_v29, %v4174_v59  ;;  %v4175_v56 = vmax.f32 %v3545_v40, 0.0 }
 0x1da   :  { %v1814_v34 = vadd.f32 %v4173_v31, %v4172_v23  ;;  %v4176_v58 = vmax.f32 %v3548_v55, 0.0  ;;  %v1850_v6 = vmax.f32 %v3556_v48, 0.0  ;;  %v1854_v37 = vadd.f32 %v3528_v27, %v3198_v20 }
 0x1db   :  { %v1866_v10 = vadd.f32 %v3528_v27, %v3204_v41  ;;  %v1874_v35 = vadd.f32 %v3528_v27, %v3298_v22  ;;  %v2051_v1 = vadd.f32 %v2047_v52, %v2043_v11  ;;  %v2115_v61 = vmax.f32 %v2111_v14, 0.0  ;;  %v4180_v14 = vld [vmem:[#allocation56_spill] sm:$0xff] }
 0x1dc   :  { %v1818_v19 = vadd.f32 %v4176_v58, %v4175_v56  ;;  %v2123_v2 = vadd.f32 %v2103_v44, %v2095_v36  ;;  %v1858_v40 = vadd.f32 %v1854_v37, %v4177_v50  ;;  %v1882_v48 = vadd.f32 %v3528_v27, %v3325_v8  ;;  %v4181_v50 = vld [vmem:[#allocation22_spill] sm:$0xff] }
 0x1dd   :  { %v1870_v47 = vmax.f32 %v1866_v10, 0.0  ;;  %v1878_v55 = vmax.f32 %v1874_v35, 0.0  ;;  %v2055_v15 = vadd.f32 %v2051_v1, %v2039_v24  ;;  %v4178_v46 = vmax.f32 %v3552_v16, 0.0 }
 0x1de   :  { %v1822_v53 = vadd.f32 %v1818_v19, %v1814_v34  ;;  %v2127_v4 = vadd.f32 %v2123_v2, %v2119_v51  ;;  %v1922_v60 = vadd.f32 %v3531_v43, %v4146_v17  ;;  %v1862_v18 = vmax.f32 %v1858_v40, 0.0 }
 0x1df   :  { %v1886_v13 = vmax.f32 %v1882_v48, 0.0  ;;  %v1894_v45 = vadd.f32 %v1878_v55, %v1870_v47  ;;  %v1930_v49 = vadd.f32 %v3531_v43, %v3198_v20  ;;  %v2139_v9 = vadd.f32 %v2055_v15, %v1979_v30  ;;  %v4182_v55 = vld [vmem:[#allocation84_spill] sm:$0xff] }
 0x1e0   :  { %v1826_v32 = vadd.f32 %v1822_v53, %v4178_v46  ;;  %v2131_v0 = vadd.f32 %v2127_v4, %v2115_v61  ;;  %v1926_v25 = vmax.f32 %v1922_v60, 0.0  ;;  %v1938_v27 = vadd.f32 %v3531_v43, %v3204_v41  ;;  %v4183_v48 = vld [vmem:[#allocation64_spill] sm:$0xff]  ;;  %v4184_v4 = vld [vmem:[#allocation26_spill] sm:$0xff] }
 0x1e1   :  { %v1890_v7 = vadd.f32 %v1862_v18, %v1850_v6  ;;  %v1934_v21 = vmax.f32 %v1930_v49, 0.0  ;;  %v1950_v16 = vadd.f32 %v3531_v43, %v3298_v22  ;;  %v1958_v62 = vadd.f32 %v3531_v43, %v3325_v8  ;;  %v4186_v60 = vld [vmem:[#allocation12_spill] sm:$0xff] }
 0x1e2   :  { %v2143_v63 = vadd.f32 %v2139_v9, %v2135_v57  ;;  %v1942_v11 = vadd.f32 %v1938_v27, %v4179_v5  ;;  %v1998_v28 = vadd.f32 %v3534_v26, %v4146_v17  ;;  %v2006_v12 = vadd.f32 %v3534_v26, %v3198_v20  ;;  %v4192_v9 = vld [vmem:[#allocation35_spill] sm:$0xff] }
 0x1e3   :  { %v1898_v24 = vadd.f32 %v1894_v45, %v1890_v7  ;;  %v1954_v3 = vmax.f32 %v1950_v16, 0.0  ;;  %v1962_v33 = vmax.f32 %v1958_v62, 0.0  ;;  %v1966_v38 = vadd.f32 %v1934_v21, %v1926_v25  ;;  %v4188_v45 = vld [vmem:[#allocation19_spill] sm:$0xff]  ;;  %v4193_v21 = vld [vmem:[#allocation45_spill] sm:$0xff] }
 0x1e4   :  { %v2147_v36 = vadd.f32 %v2143_v63, %v2131_v0  ;;  %v1946_v39 = vmax.f32 %v1942_v11, 0.0  ;;  %v2002_v29 = vmax.f32 %v1998_v28, 0.0  ;;  %v2010_v30 = vmax.f32 %v2006_v12, 0.0  ;;  %v4194_v62 = vld [vmem:[#allocation85_spill] sm:$0xff] }
 0x1e5   :  { %v1902_v51 = vadd.f32 %v1898_v24, %v1886_v13  ;;  %v2014_v43 = vadd.f32 %v3534_v26, %v3204_v41  ;;  %v2022_v57 = vadd.f32 %v3534_v26, %v3298_v22  ;;  %v2034_v23 = vadd.f32 %v3534_v26, %v3325_v8  ;;  %v4195_v12 = vld [vmem:[#allocation29_spill] sm:$0xff] }
 0x1e6   :  { %2415 = vmatpush3.msra.mxu1 %v2147_v36  ;;  %v1970_v31 = vadd.f32 %v1954_v3, %v1946_v39  ;;  %v2042_v34 = vadd.f32 %v2010_v30, %v2002_v29  ;;  %v2074_v52 = vadd.f32 %v3537_v54, %v4146_v17  ;;  %v2082_v44 = vadd.f32 %v3537_v54, %v3198_v20  ;;  %v4196_v36 = vld [vmem:[#allocation17_spill] sm:$0xff] }
 0x1e7   :  { %2416 = vmatprep.subr.mxu1 %v4170_v42  ;;  %v2018_v59 = vmax.f32 %v2014_v43, 0.0  ;;  %v2026_v56 = vadd.f32 %v2022_v57, %v4180_v14  ;;  %v2038_v58 = vmax.f32 %v2034_v23, 0.0  ;;  %v2090_v19 = vadd.f32 %v3537_v54, %v3204_v41  ;;  %v4197_v43 = vld [vmem:[#allocation67_spill] sm:$0xff] }
 0x1e8   :  { %v1974_v6 = vadd.f32 %v1970_v31, %v1966_v38  ;;  %v2078_v26 = vmax.f32 %v2074_v52, 0.0  ;;  %v2086_v37 = vmax.f32 %v2082_v44, 0.0  ;;  %v2098_v10 = vadd.f32 %v3537_v54, %v3298_v22  ;;  %v4198_v52 = vld [vmem:[#allocation21_spill] sm:$0xff]  ;;  %v4199_v44 = vld [vmem:[#allocation66_spill] sm:$0xff] }
 0x1e9   :  { %v2030_v35 = vmax.f32 %v2026_v56, 0.0  ;;  %v2094_v17 = vmax.f32 %v2090_v19, 0.0  ;;  %v2106_v20 = vadd.f32 %v3537_v54, %v3325_v8  ;;  %v2134_v1 = vadd.f32 %v1902_v51, %v1826_v32  ;;  %v4190_v54 = vld [vmem:[#allocation40_spill] sm:$0xff]  ;;  %v4191_v32 = vld [vmem:[#allocation42_spill] sm:$0xff] }
 0x1ea   :  { %v1978_v61 = vadd.f32 %v1974_v6, %v1962_v33  ;;  %v2102_v2 = vmax.f32 %v2098_v10, 0.0  ;;  %v2118_v53 = vadd.f32 %v2086_v37, %v2078_v26  ;;  %v1797_v40 = vmax.f32 %v4181_v50, 0.0  ;;  %v4200_v10 = vld [vmem:[#allocation76_spill] sm:$0xff] }
 0x1eb   :  { %v2046_v47 = vadd.f32 %v2030_v35, %v2018_v59  ;;  %v2110_v41 = vadd.f32 %v2106_v20, %v4182_v55  ;;  %v1809_v15 = vmax.f32 %v4183_v48, 0.0  ;;  %v4185_v46 = vmax.f32 %v4184_v4, 0.0 }
 0x1ec   :  { %v4187_v22 = vmax.f32 %v4186_v60, 0.0  ;;  %v2122_v13 = vadd.f32 %v2102_v2, %v2094_v17  ;;  %v4189_v49 = vmax.f32 %v4188_v45, 0.0  ;;  %v1845_v0 = vadd.f32 %v4191_v32, %v4190_v54  ;;  %v4202_v60 = vld [vmem:[#allocation11_spill] sm:$0xff] }
 0x1ed   :  { %v1853_v25 = vadd.f32 %v4191_v32, %v4192_v9  ;;  %v2050_v27 = vadd.f32 %v2046_v47, %v2042_v34  ;;  %v2114_v7 = vmax.f32 %v2110_v41, 0.0  ;;  %v1865_v16 = vadd.f32 %v4191_v32, %v4193_v21 }
 0x1ee   :  { %v1813_v18 = vadd.f32 %v4187_v22, %v4185_v46  ;;  %v1817_v8 = vadd.f32 %v1797_v40, %v4189_v49  ;;  %v1873_v63 = vadd.f32 %v4191_v32, %v4194_v62  ;;  %v2126_v5 = vadd.f32 %v2122_v13, %v2118_v53 }
 0x1ef   :  { %v1849_v28 = vmax.f32 %v1845_v0, 0.0  ;;  %v1857_v24 = vadd.f32 %v1853_v25, %v4195_v12  ;;  %v2054_v3 = vadd.f32 %v2050_v27, %v2038_v58  ;;  %v1869_v33 = vmax.f32 %v1865_v16, 0.0  ;;  %v4204_v12 = vld [vmem:[#allocation53_spill] sm:$0xff] }
 0x1f0   :  { %v1821_v11 = vadd.f32 %v1817_v8, %v1813_v18  ;;  %v1877_v38 = vmax.f32 %v1873_v63, 0.0  ;;  %v1881_v39 = vadd.f32 %v4191_v32, %v4196_v36  ;;  %v2130_v29 = vadd.f32 %v2126_v5, %v2114_v7  ;;  %v4203_v32 = vld [vmem:[#allocation38_spill] sm:$0xff] }
 0x1f1   :  { %v1861_v51 = vmax.f32 %v1857_v24, 0.0  ;;  %v1921_v57 = vadd.f32 %v4197_v43, %v4190_v54  ;;  %v2138_v23 = vadd.f32 %v2054_v3, %v1978_v61  ;;  %v1929_v34 = vadd.f32 %v4197_v43, %v4192_v9  ;;  %v4201_v61 = vld [vmem:[#allocation36_spill] sm:$0xff]  ;;  %v4205_v24 = vld [vmem:[#allocation73_spill] sm:$0xff] }
 0x1f2   :  { %v1825_v30 = vadd.f32 %v1821_v11, %v1809_v15  ;;  %v1893_v31 = vadd.f32 %v1877_v38, %v1869_v33  ;;  %v1293_v59 = vadd.f32 %v4199_v44, %v4198_v52  ;;  %v1937_v58 = vadd.f32 %v4197_v43, %v4193_v21  ;;  %v4206_v38 = vld [vmem:[#allocation39_spill] sm:$0xff] }
 0x1f3   :  { %v1889_v14 = vadd.f32 %v1861_v51, %v1849_v28  ;;  %v1925_v56 = vmax.f32 %v1921_v57, 0.0  ;;  %v1949_v19 = vadd.f32 %v4197_v43, %v4194_v62  ;;  %v2142_v6 = vadd.f32 %v2138_v23, %v2134_v1  ;;  %v4208_v23 = vld [vmem:[#allocation37_spill] sm:$0xff] }
 0x1f4   :  { %v1933_v26 = vmax.f32 %v1929_v34, 0.0  ;;  %v1957_v37 = vadd.f32 %v4197_v43, %v4196_v36  ;;  %v1997_v35 = vadd.f32 %v4200_v10, %v4190_v54  ;;  %v1885_v17 = vmax.f32 %v1881_v39, 0.0  ;;  %v4207_v43 = vld [vmem:[#allocation82_spill] sm:$0xff] }
 0x1f5   :  { %v1897_v20 = vadd.f32 %v1893_v31, %v1889_v14  ;;  %v1941_v2 = vadd.f32 %v1937_v58, %v4201_v61  ;;  %v2005_v53 = vadd.f32 %v4200_v10, %v4192_v9  ;;  %v2146_v50 = vadd.f32 %v2142_v6, %v2130_v29  ;;  %v4209_v31 = vld [vmem:[#allocation77_spill] sm:$0xff]  ;;  %v4211_v34 = vld [vmem:[#allocation34_spill] sm:$0xff] }
 0x1f6   :  { %v1953_v40 = vmax.f32 %v1949_v19, 0.0  ;;  %v1961_v47 = vmax.f32 %v1957_v37, 0.0  ;;  %v2001_v55 = vmax.f32 %v1997_v35, 0.0  ;;  %v2013_v15 = vadd.f32 %v4200_v10, %v4193_v21  ;;  %v4213_v19 = vld [vmem:[#allocation81_spill] sm:$0xff] }
 0x1f7   :  { %v1901_v41 = vadd.f32 %v1897_v20, %v1885_v17  ;;  %v1945_v1 = vmax.f32 %v1941_v2, 0.0  ;;  %v2009_v48 = vmax.f32 %v2005_v53, 0.0  ;;  %2417 = vmatpush3.msra.mxu1 %v2146_v50  ;;  %v1965_v4 = vadd.f32 %v1933_v26, %v1925_v56  ;;  %v4215_v37 = vld [vmem:[#allocation9_spill] sm:$0xff]  ;;  %v4217_v20 = vld [vmem:[#allocation10_spill] sm:$0xff]  ;;  %v4218_v2 = vld [vmem:[#allocation20_spill] sm:$0xff] }
 0x1f8   :  { %v2021_v46 = vadd.f32 %v4200_v10, %v4194_v62  ;;  %v2073_v22 = vadd.f32 %v4202_v60, %v4190_v54  ;;  %v2081_v18 = vadd.f32 %v4202_v60, %v4192_v9  ;;  %2418 = vmatprep.subr.mxu1 %v4170_v42  ;;  %v2017_v45 = vmax.f32 %v2013_v15, 0.0 }
 0x1f9   :  { %v1969_v13 = vadd.f32 %v1953_v40, %v1945_v1  ;;  %v2033_v49 = vadd.f32 %v4200_v10, %v4196_v36  ;;  %v2089_v8 = vadd.f32 %v4202_v60, %v4193_v21  ;;  %v2041_v25 = vadd.f32 %v2009_v48, %v2001_v55  ;;  %v4216_v10 = vld [vmem:[#allocation71_spill] sm:$0xff]  ;;  %v4219_v1 = vld [vmem:[#allocation62_spill] sm:$0xff] }
 0x1fa   :  { %v2025_v0 = vadd.f32 %v2021_v46, %v4203_v32  ;;  %v2077_v27 = vmax.f32 %v2073_v22, 0.0  ;;  %v2085_v7 = vmax.f32 %v2081_v18, 0.0  ;;  %v2097_v9 = vadd.f32 %v4202_v60, %v4194_v62  ;;  %v4220_v22 = vld [vmem:[#allocation58_spill] sm:$0xff] }
 0x1fb   :  { %v1973_v16 = vadd.f32 %v1969_v13, %v1965_v4  ;;  %v2093_v54 = vmax.f32 %v2089_v8, 0.0  ;;  %v2105_v63 = vadd.f32 %v4202_v60, %v4196_v36  ;;  %v2133_v28 = vadd.f32 %v1901_v41, %v1825_v30 }
 0x1fc   :  { %v2029_v5 = vmax.f32 %v2025_v0, 0.0  ;;  %v2117_v11 = vadd.f32 %v2085_v7, %v2077_v27  ;;  %v1642_v3 = vadd.f32 %v4205_v24, %v4204_v12  ;;  %v2101_v33 = vmax.f32 %v2097_v9, 0.0 }
 0x1fd   :  { %v1977_v21 = vadd.f32 %v1973_v16, %v1961_v47  ;;  %v2109_v39 = vadd.f32 %v2105_v63, %v4206_v38  ;;  %v1297_v29 = vmax.f32 %v1293_v59, 0.0  ;;  %v1305_v62 = vadd.f32 %v4199_v44, %v4208_v23  ;;  %v4221_v63 = vld [vmem:[#allocation23_spill] sm:$0xff] }
 0x1fe   :  { %v2045_v51 = vadd.f32 %v2029_v5, %v2017_v45  ;;  %v3808_v57 = vadd.f32 %v1642_v3, %v4207_v43  ;;  %v4210_v36 = vmax.f32 %v4209_v31, 0.0  ;;  %v4212_v14 = vmax.f32 %v4211_v34, 0.0 }
 0x1ff   :  { %v2037_v56 = vmax.f32 %v2033_v49, 0.0  ;;  %v2121_v58 = vadd.f32 %v2101_v33, %v2093_v54  ;;  %v4214_v6 = vmax.f32 %v4213_v19, 0.0  ;;  %v1345_v59 = vadd.f32 %v4216_v10, %v4215_v37  ;;  %v4224_v19 = vld [vmem:[#allocation90_spill] sm:$0xff] }
 0x200   :  { %v1313_v30 = vadd.f32 %v4212_v14, %v4210_v36  ;;  %v2049_v35 = vadd.f32 %v2045_v51, %v2041_v25  ;;  %v2113_v17 = vmax.f32 %v2109_v39, 0.0  ;;  %v1353_v61 = vadd.f32 %v4216_v10, %v4217_v20  ;;  %v4223_v36 = vld [vmem:[#allocation60_spill] sm:$0xff] }
 0x201   :  { %v1317_v26 = vadd.f32 %v1297_v29, %v4214_v6  ;;  %v1365_v44 = vadd.f32 %v4216_v10, %v4218_v2  ;;  %v2125_v53 = vadd.f32 %v2121_v58, %v2117_v11  ;;  %v1309_v50 = vmax.f32 %v1305_v62, 0.0  ;;  %v4222_v11 = vld [vmem:[#allocation59_spill] sm:$0xff]  ;;  %v4225_v6 = vld [vmem:[#allocation24_spill] sm:$0xff] }
 0x202   :  { %v1373_v47 = vadd.f32 %v4216_v10, %v4198_v52  ;;  %v2053_v55 = vadd.f32 %v2049_v35, %v2037_v56  ;;  %v1349_v41 = vmax.f32 %v1345_v59, 0.0  ;;  %v1357_v48 = vadd.f32 %v1353_v61, %v4219_v1 }
 0x203   :  { %v1321_v40 = vadd.f32 %v1317_v26, %v1313_v30  ;;  %v1369_v15 = vmax.f32 %v1365_v44, 0.0  ;;  %v2129_v4 = vadd.f32 %v2125_v53, %v2113_v17  ;;  %v1421_v18 = vadd.f32 %v4220_v22, %v4215_v37  ;;  %v4226_v44 = vld [vmem:[#allocation80_spill] sm:$0xff] }
 0x204   :  { %v1377_v60 = vmax.f32 %v1373_v47, 0.0  ;;  %v2137_v13 = vadd.f32 %v2053_v55, %v1977_v21  ;;  %v1361_v45 = vmax.f32 %v1357_v48, 0.0  ;;  %v1381_v49 = vadd.f32 %v4216_v10, %v4208_v23  ;;  %v2150_v21 = vld [vmem:[%s3886_s4] sm:$0x3] }
 0x205   :  { %v1325_v46 = vadd.f32 %v1321_v40, %v1309_v50  ;;  %v1429_v8 = vadd.f32 %v4220_v22, %v4217_v20  ;;  %v1425_v0 = vmax.f32 %v1421_v18, 0.0  ;;  %v1437_v25 = vadd.f32 %v4220_v22, %v4218_v2 }
 0x206   :  { %v1393_v32 = vadd.f32 %v1377_v60, %v1369_v15  ;;  %v1449_v27 = vadd.f32 %v4220_v22, %v4198_v52  ;;  %v2141_v7 = vadd.f32 %v2137_v13, %v2133_v28  ;;  %v1389_v16 = vadd.f32 %v1361_v45, %v1349_v41  ;;  %v4227_v41 = vld [vmem:[#allocation25_spill] sm:$0xff] }
 0x207   :  { %v1433_v54 = vmax.f32 %v1429_v8, 0.0  ;;  %v1457_v9 = vadd.f32 %v4220_v22, %v4208_v23  ;;  %v1441_v5 = vadd.f32 %v1437_v25, %v4221_v63  ;;  %v1497_v12 = vadd.f32 %v4222_v11, %v4215_v37 }
 0x208   :  { %v1505_v24 = vadd.f32 %v4222_v11, %v4217_v20  ;;  %v2145_v3 = vadd.f32 %v2141_v7, %v2129_v4  ;;  %v1385_v33 = vmax.f32 %v1381_v49, 0.0  ;;  %v1397_v28 = vadd.f32 %v1393_v32, %v1389_v16  ;;  %v2149_v32 = vld [vmem:[%s3885_s3] sm:$0x3] }
 0x209   :  { %v1445_v38 = vmax.f32 %v1441_v5, 0.0  ;;  %v1453_v39 = vmax.f32 %v1449_v27, 0.0  ;;  %v1461_v29 = vmax.f32 %v1457_v9, 0.0  ;;  %v1465_v51 = vadd.f32 %v1433_v54, %v1425_v0  ;;  %v2301_v27 = vpop.permute.xlu0 %2300 }
 0x20a   :  { %2419 = vmatpush3.msra.mxu1 %v2145_v3  ;;  %v1401_v43 = vadd.f32 %v1397_v28, %v1385_v33  ;;  %v1513_v62 = vadd.f32 %v4222_v11, %v4218_v2  ;;  %v1521_v31 = vadd.f32 %v4222_v11, %v4198_v52  ;;  %v1573_v34 = vadd.f32 %v4223_v36, %v4215_v37 }
 0x20b   :  { %2423 = vmatprep.subr.mxu1 %v4170_v42  ;;  %2421 = vmatmul.mubr.msk.f32.vlgmr.msra.gmra.mxu1 %vm229_vm0, %v2150_v21  ;;  %v1469_v14 = vadd.f32 %v1453_v39, %v1445_v38  ;;  %v1501_v30 = vmax.f32 %v1497_v12, 0.0  ;;  %v1509_v56 = vmax.f32 %v1505_v24, 0.0  ;;  %v1581_v58 = vadd.f32 %v4223_v36, %v4217_v20 }
 0x20c   :  { %2424 = vmatpush3.msra.mxu1 %v4224_v19  ;;  %v1525_v26 = vadd.f32 %v1521_v31, %v4225_v6  ;;  %v1533_v10 = vadd.f32 %v4222_v11, %v4208_v23  ;;  %v1577_v59 = vmax.f32 %v1573_v34, 0.0  ;;  %v1589_v37 = vadd.f32 %v4223_v36, %v4218_v2  ;;  %2431 = vmatprep.mubr.msk.f32.mxu1 %vm2536_vm1, %v4170_v42 }
 0x20d   :  { %2425 = vmatprep.subr.mxu1 %v4170_v42  ;;  %v1473_v35 = vadd.f32 %v1469_v14, %v1465_v51  ;;  %v1585_v17 = vmax.f32 %v1581_v58, 0.0  ;;  %v1597_v20 = vadd.f32 %v4223_v36, %v4198_v52  ;;  %v1605_v61 = vadd.f32 %v4223_v36, %v4208_v23 }
 0x20e   :  { %2426 = vmatpush3.msra.mxu1 %v4226_v44  ;;  %v1517_v53 = vmax.f32 %v1513_v62, 0.0  ;;  %v1529_v50 = vmax.f32 %v1525_v26, 0.0  ;;  %v1593_v40 = vmax.f32 %v1589_v37, 0.0  ;;  %v1633_v47 = vadd.f32 %v1401_v43, %v1325_v46 }
 0x20f   :  { %2427 = vmatprep.subr.mxu1 %v4170_v42  ;;  %v1477_v2 = vadd.f32 %v1473_v35, %v1461_v29  ;;  %v1601_v55 = vmax.f32 %v1597_v20, 0.0  ;;  %v1609_v1 = vadd.f32 %v1605_v61, %v4227_v41  ;;  %v1617_v48 = vadd.f32 %v1585_v17, %v1577_v59 }
 0x210   :  { %2428 = vmatpush3.msra.mxu1 %v3808_v57  ;;  %v1541_v15 = vadd.f32 %v1509_v56, %v1501_v30  ;;  %v1545_v52 = vadd.f32 %v1529_v50, %v1517_v53  ;;  %v1537_v4 = vmax.f32 %v1533_v10, 0.0 }
 0x211   :  { %2429 = vmatprep.subr.mxu1 %v4170_v42  ;;  %v1621_v23 = vadd.f32 %v1601_v55, %v1593_v40  ;;  %v1613_v22 = vmax.f32 %v1609_v1, 0.0 }
 0x212   :  { %v1549_v60 = vadd.f32 %v1545_v52, %v1541_v15 }
 0x213   :  { %v1625_v18 = vadd.f32 %v1621_v23, %v1617_v48 }
 0x214   :  { %v1553_v13 = vadd.f32 %v1549_v60, %v1537_v4 }
 0x215   :  { %v1629_v46 = vadd.f32 %v1625_v18, %v1613_v22 }
 0x216   :  { %v1637_v45 = vadd.f32 %v1553_v13, %v1477_v2 }
 0x218   :  { %v1641_v49 = vadd.f32 %v1637_v45, %v1633_v47 }
 0x21a   :  { %v1645_v8 = vadd.f32 %v1641_v49, %v1629_v46 }
 0x21c   :  { %2430 = vmatpush3.msra.mxu1 %v1645_v8 }
 0x21d   :  { %2432 = vmatmul.mubr.msk.f32.vlgmr.msra.gmra.mxu1 %vm229_vm0, %v2149_v32 }
 0x2cb   :  { %v2220_v57 = vpop.f32.mrf.mxu1 }
 0x2cd   :  { %v2422_v0 = vpop.f32.mrf.mxu1 }
 0x2dd   :  { %v2293_v42 = vpop.f32.mrf.mxu1 }
 0x2de   :  { %v2294_v25 = vadd.f32 %v2293_v42, %v2220_v57 }
 0x2df   :  { %v2433_v7 = vpop.f32.mrf.mxu1 }
 0x2e0   :  { %v2303_v16 = vadd.f32 %v2301_v27, %v2294_v25 }
 0x2e2   :  { %2304 = vst [vmem:[#allocation6] sm:$0x3] %v2303_v16 }
 0x2e3   :  { %2518 = shalt.err (!%p2515_p9)
}
 0x2e4   :  { %2314 = dma.vmem_to_hbm [thread:$0]  %s2312_s9, 32, %s3888_s6, [#allocation5]  }
 0x2e5   :  { %2529 = dma.done.wait [#allocation5], 32  }
 0x2e6   :  { %2530 = vsyncadd [#allocation5], 4294967264 }
 0x2e7   :  { %2318 = vsyncpa [#allocation4], 1 }
 0x2e8   :  { %2319 = vsyncpa [#allocation5], 1 }

</bundles_post_ra>
